<compile_context>
chip_gen: v7x
topology: tpu7x:2x2x1
jax: 0.10.0
libtpu: 0.0.40
codegen_flags: <defaults>
</compile_context>

<pallas_src>
from functools import partial

import jax
import jax.numpy as jnp
from jax import lax
from jax.experimental import pallas as pl
from jax.experimental.pallas import tpu as pltpu


def _lstm_chunk_kernel(gx0_ref, h_init_ref, c_init_ref, b0_ref,
                       whh0_ref, wih1_ref, whh1_ref, b1_ref,
                       hn_ref, cn_ref):
    Tc = gx0_ref.shape[0]
    B = h_init_ref.shape[1]
    H = h_init_ref.shape[2]

    # First chunk: seed the carried state (resident output blocks) from the
    # user-provided hidden state.
    @pl.when(pl.program_id(0) == 0)
    def _():
        hn_ref[...] = h_init_ref[...]
        cn_ref[...] = c_init_ref[...]

    # Resident weights (bf16 MXU operands); bias broadcasts hoisted out of the
    # time loop (JAX does not CSE broadcast_in_dim inside the loop).
    whh0 = whh0_ref[...]                                  # (H, 4H)  bf16
    wih1 = wih1_ref[...]                                  # (H, 4H)  bf16
    whh1 = whh1_ref[...]                                  # (H, 4H)  bf16
    b0 = jnp.broadcast_to(b0_ref[...], (B, 4 * H))        # f32
    b1 = jnp.broadcast_to(b1_ref[...], (B, 4 * H))        # f32

    def gate_math(gates, c_prev):
        # Gate columns are pre-permuted to [i, f, o, g] and the sigmoid gates
        # pre-scaled by 0.5 in the wrapper, so sigmoid(x) = 0.5*(1 + tanh(x/2))
        # turns all four nonlinearities into ONE tanh over the (B, 4H) slab.
        t = jnp.tanh(gates)
        i = 0.5 * (t[:, 0 * H:1 * H] + 1.0)
        f = 0.5 * (t[:, 1 * H:2 * H] + 1.0)
        o = 0.5 * (t[:, 2 * H:3 * H] + 1.0)
        g = t[:, 3 * H:4 * H]
        c = f * c_prev + i * g
        h = o * jnp.tanh(c)
        return h, c

    def step(tt, carry):
        h0, c0, h1, c1 = carry
        # Layer-1 recurrent half: independent of h0_t -> kept off layer-0's
        # nonlinearity critical path (no concat / fused K=2H dot).
        g1_hh = jnp.dot(h1.astype(whh1.dtype), whh1,
                        preferred_element_type=jnp.float32)
        # Layer 0: x@W_ih0 hoisted to the wrapper (streamed bf16 gx0);
        # bias added here in f32.
        gates0 = (gx0_ref[tt].astype(jnp.float32) + b0
                  + jnp.dot(h0.astype(whh0.dtype), whh0,
                            preferred_element_type=jnp.float32))
        h0, c0 = gate_math(gates0, c0)
        # inter-layer dropout (p=0.5) is identity at inference time
        gates1 = (g1_hh + b1
                  + jnp.dot(h0.astype(wih1.dtype), wih1,
                            preferred_element_type=jnp.float32))
        h1, c1 = gate_math(gates1, c1)
        return h0, c0, h1, c1

    init = (hn_ref[0], cn_ref[0], hn_ref[1], cn_ref[1])
    h0, c0, h1, c1 = lax.fori_loop(0, Tc, step, init, unroll=True)  # Tc <= 8

    hn_ref[0] = h0
    hn_ref[1] = h1
    cn_ref[0] = c0
    cn_ref[1] = c1


def _permute_and_scale_gates(w, H):
    """Reorder gate columns [i,f,g,o] (PyTorch) -> [i,f,o,g]; pre-scale i/f/o by 0.5.

    Works on the last axis: (..., 4H) weights-transposed or (4H,) biases.
    """
    i = w[..., 0 * H:1 * H]
    f = w[..., 1 * H:2 * H]
    g = w[..., 2 * H:3 * H]
    o = w[..., 3 * H:4 * H]
    return jnp.concatenate([0.5 * i, 0.5 * f, 0.5 * o, g], axis=-1)


@partial(jax.jit, static_argnames=("time_chunk",))
def sentiment_rnn_forward(x_ids, hidden, params, *, time_chunk=8):
    """x_ids: (B, T) int32 token ids; hidden = (h0, c0), each (n_layers, B, H)."""
    h0_init, c0_init = hidden
    B, T = x_ids.shape
    H = params["whh0"].shape[1]
    assert T % time_chunk == 0, "time_chunk must divide the sequence length"
    assert time_chunk <= 8, "cap the in-kernel unroll at 8 timesteps"
    num_chunks = T // time_chunk

    # --- glue: embedding lookup, emitted directly time-major (transpose the
    #     tiny int32 id matrix instead of the large activation) ---
    x_tm = jnp.take(params["embed"], x_ids.T, axis=0)          # (T, B, E) f32

    # --- one-time weight prep: transpose, permute gate cols to [i,f,o,g],
    #     pre-scale sigmoid gates by 0.5, cast matmul operands to bf16 ---
    wih0 = _permute_and_scale_gates(params["wih0"].T, H).astype(jnp.bfloat16)   # (E, 4H)
    whh0 = _permute_and_scale_gates(params["whh0"].T, H).astype(jnp.bfloat16)   # (H, 4H)
    wih1 = _permute_and_scale_gates(params["wih1"].T, H).astype(jnp.bfloat16)   # (H, 4H)
    whh1 = _permute_and_scale_gates(params["whh1"].T, H).astype(jnp.bfloat16)   # (H, 4H)
    b0 = _permute_and_scale_gates(params["bih0"] + params["bhh0"], H
                                  ).reshape(1, 4 * H).astype(jnp.float32)
    b1 = _permute_and_scale_gates(params["bih1"] + params["bhh1"], H
                                  ).reshape(1, 4 * H).astype(jnp.float32)

    # --- hoisted, time-independent layer-0 input projection (f32 MXU
    #     accumulation), streamed to the kernel in bf16, time-major ---
    gx0 = jnp.einsum("tbe,eg->tbg", x_tm.astype(jnp.bfloat16), wih0,
                     preferred_element_type=jnp.float32
                     ).astype(jnp.bfloat16)                     # (T, B, 4H)

    const2 = lambda t: (0, 0)
    const3 = lambda t: (0, 0, 0)

    h_n, c_n = pl.pallas_call(
        _lstm_chunk_kernel,
        out_shape=(
            jax.ShapeDtypeStruct((2, B, H), jnp.float32),       # h_n
            jax.ShapeDtypeStruct((2, B, H), jnp.float32),       # c_n
        ),
        grid_spec=pltpu.PrefetchScalarGridSpec(
            num_scalar_prefetch=0,
            grid=(num_chunks,),                                 # sequential time chunks
            in_specs=[
                pl.BlockSpec((time_chunk, B, 4 * H), lambda t: (t, 0, 0)),  # gx0 stream (bf16)
                pl.BlockSpec((2, B, H), const3),                # h init
                pl.BlockSpec((2, B, H), const3),                # c init
                pl.BlockSpec((1, 4 * H), const2),               # b0 (f32)
                pl.BlockSpec((H, 4 * H), const2),               # W_hh0^T (bf16)
                pl.BlockSpec((H, 4 * H), const2),               # W_ih1^T (bf16)
                pl.BlockSpec((H, 4 * H), const2),               # W_hh1^T (bf16)
                pl.BlockSpec((1, 4 * H), const2),               # b1 (f32)
            ],
            out_specs=(
                pl.BlockSpec((2, B, H), const3),                # resident across chunks
                pl.BlockSpec((2, B, H), const3),
            ),
        ),
        compiler_params=pltpu.CompilerParams(
            dimension_semantics=("arbitrary",),                 # time is sequential
        ),
    )(gx0, h0_init, c0_init, b0, whh0, wih1, whh1, b1)

    # --- epilogue: out.view(-1,H) -> dropout(eval=id) -> fc -> sigmoid ->
    #     view(B,-1)[:, -1]  keeps only sigmoid(fc(h_{T-1}^{layer1}))[:, 1].
    #     FC folded to that single column (no lane-width-2 matmul). ---
    logit = jnp.dot(h_n[1], params["wfc"][1]) + params["bfc"][1]   # (B,)
    sig_out = jax.nn.sigmoid(logit)
    return sig_out, (h_n, c_n)


def _reference_forward(x_ids, hidden, params):
    """Pure-JAX reference: per-timestep LSTM, PyTorch [i,f,g,o] gate order,
    bf16 matmul operands with f32 accumulation (the kernel's MXU policy)."""
    h_in, c_in = hidden
    B, T = x_ids.shape
    H = params["whh0"].shape[1]
    x = jnp.take(params["embed"], x_ids, axis=0)
    wih = [params["wih0"], params["wih1"]]
    whh = [params["whh0"], params["whh1"]]
    bih = [params["bih0"], params["bih1"]]
    bhh = [params["bhh0"], params["bhh1"]]
    h = [h_in[0], h_in[1]]
    c = [c_in[0], c_in[1]]
    for t in range(T):
        inp = x[:, t, :]
        for l in range(2):
            gates = (jnp.dot(inp.astype(jnp.bfloat16), wih[l].T.astype(jnp.bfloat16),
                             preferred_element_type=jnp.float32)
                     + jnp.dot(h[l].astype(jnp.bfloat16), whh[l].T.astype(jnp.bfloat16),
                               preferred_element_type=jnp.float32)
                     + bih[l] + bhh[l])
            i = jax.nn.sigmoid(gates[:, 0 * H:1 * H])
            f = jax.nn.sigmoid(gates[:, 1 * H:2 * H])
            g = jnp.tanh(gates[:, 2 * H:3 * H])
            o = jax.nn.sigmoid(gates[:, 3 * H:4 * H])
            c[l] = f * c[l] + i * g
            h[l] = o * jnp.tanh(c[l])
            inp = h[l]
    h_n = jnp.stack(h)
    c_n = jnp.stack(c)
    logits = jnp.dot(h[1], params["wfc"].T) + params["bfc"]
    sig = jax.nn.sigmoid(logits)[:, -1]
    return sig, (h_n, c_n)


def init_params(key, vocab_size, embedding_dim, hidden_dim):
    ks = jax.random.split(key, 12)
    s = 1.0 / jnp.sqrt(hidden_dim)
    u = lambda k, shape: jax.random.uniform(k, shape, jnp.float32, -s, s)
    return {
        "embed": jax.random.normal(ks[0], (vocab_size, embedding_dim), jnp.float32),
        "wih0": u(ks[1], (4 * hidden_dim, embedding_dim)),
        "whh0": u(ks[2], (4 * hidden_dim, hidden_dim)),
        "bih0": u(ks[3], (4 * hidden_dim,)),
        "bhh0": u(ks[4], (4 * hidden_dim,)),
        "wih1": u(ks[5], (4 * hidden_dim, hidden_dim)),
        "whh1": u(ks[6], (4 * hidden_dim, hidden_dim)),
        "bih1": u(ks[7], (4 * hidden_dim,)),
        "bhh1": u(ks[8], (4 * hidden_dim,)),
        "wfc": u(ks[9], (2, hidden_dim)),
        "bfc": u(ks[10], (2,)),
    }


if __name__ == "__main__":
    # small shapes consistent with the module (embedding_dim/hidden_dim scaled down)
    vocab_size = 50
    embedding_dim = 128
    hidden_dim = 128
    n_layers = 2
    batch = 8
    seq_len = 8

    key = jax.random.PRNGKey(0)
    kp, kx = jax.random.split(key)
    params = init_params(kp, vocab_size, embedding_dim, hidden_dim)

    x_ids = jax.random.randint(kx, (batch, seq_len), 0, vocab_size, dtype=jnp.int32)
    hidden = (jnp.zeros((n_layers, batch, hidden_dim), jnp.float32),
              jnp.zeros((n_layers, batch, hidden_dim), jnp.float32))

    # time_chunk=4 -> 2 sequential grid steps: exercises the streamed-gx0 path
    # and the cross-chunk carried state.
    sig_out, (h_n, c_n) = sentiment_rnn_forward(x_ids, hidden, params, time_chunk=4)
    jax.block_until_ready((sig_out, h_n, c_n))

    assert sig_out.shape == (batch,)
    assert h_n.shape == (n_layers, batch, hidden_dim)
    assert c_n.shape == (n_layers, batch, hidden_dim)

    # correctness check against a pure-JAX reference; tolerance covers the extra
    # bf16 rounding of the streamed layer-0 projection (gx0) over the recurrence.
    sig_ref, (h_ref, c_ref) = _reference_forward(x_ids, hidden, params)
    assert jnp.allclose(sig_out, sig_ref, atol=1e-2, rtol=1e-2)
    assert jnp.allclose(h_n, h_ref, atol=1e-2, rtol=1e-2)
    assert jnp.allclose(c_n, c_ref, atol=1e-2, rtol=1e-2)

    print("KERNEL_OK")
</pallas_src>

<mosaic_0001>
module attributes {stable_mosaic.version = 11 : i64} {
  func.func @_lstm_chunk_kernel(%arg0: i32, %arg1: memref<4x8x512xbf16, #tpu.memory_space<vmem>>, %arg2: memref<2x8x128xf32, #tpu.memory_space<vmem>>, %arg3: memref<2x8x128xf32, #tpu.memory_space<vmem>>, %arg4: memref<1x512xf32, #tpu.memory_space<vmem>>, %arg5: memref<128x512xbf16, #tpu.memory_space<vmem>>, %arg6: memref<128x512xbf16, #tpu.memory_space<vmem>>, %arg7: memref<128x512xbf16, #tpu.memory_space<vmem>>, %arg8: memref<1x512xf32, #tpu.memory_space<vmem>>, %arg9: memref<2x8x128xf32, #tpu.memory_space<vmem>>, %arg10: memref<2x8x128xf32, #tpu.memory_space<vmem>>) attributes {dimension_semantics = [#tpu.dimension_semantics<arbitrary>], iteration_bounds = array<i64: 2>, scalar_prefetch = 0 : i64, scratch_operands = 0 : i64, tpu.core_type = #tpu.core_type<tc>, window_params = [{transform_indices = @transform_0, window_bounds = array<i64: 4, 8, 512>}, {pipeline_mode = #tpu.pipeline_mode<synchronous>, transform_indices = @transform_1, window_bounds = array<i64: 2, 8, 128>}, {pipeline_mode = #tpu.pipeline_mode<synchronous>, transform_indices = @transform_2, window_bounds = array<i64: 2, 8, 128>}, {pipeline_mode = #tpu.pipeline_mode<synchronous>, transform_indices = @transform_3, window_bounds = array<i64: 1, 512>}, {pipeline_mode = #tpu.pipeline_mode<synchronous>, transform_indices = @transform_4, window_bounds = array<i64: 128, 512>}, {pipeline_mode = #tpu.pipeline_mode<synchronous>, transform_indices = @transform_5, window_bounds = array<i64: 128, 512>}, {pipeline_mode = #tpu.pipeline_mode<synchronous>, transform_indices = @transform_6, window_bounds = array<i64: 128, 512>}, {pipeline_mode = #tpu.pipeline_mode<synchronous>, transform_indices = @transform_7, window_bounds = array<i64: 1, 512>}, {pipeline_mode = #tpu.pipeline_mode<synchronous>, transform_indices = @transform_8, window_bounds = array<i64: 2, 8, 128>}, {pipeline_mode = #tpu.pipeline_mode<synchronous>, transform_indices = @transform_9, window_bounds = array<i64: 2, 8, 128>}]} {
    %c0_i32 = arith.constant 0 : i32
    %0 = arith.cmpi eq, %arg0, %c0_i32 : i32
    %1 = arith.extui %0 : i1 to i32
    %c0_i32_0 = arith.constant 0 : i32
    %2 = arith.cmpi ne, %1, %c0_i32_0 : i32
    scf.if %2 {
      %c0_101 = arith.constant 0 : index
      %c0_102 = arith.constant 0 : index
      %c0_103 = arith.constant 0 : index
      %264 = vector.load %arg2[%c0_101, %c0_102, %c0_103] : memref<2x8x128xf32, #tpu.memory_space<vmem>>, vector<2x8x128xf32>
      %c0_104 = arith.constant 0 : index
      %c0_105 = arith.constant 0 : index
      %c0_106 = arith.constant 0 : index
      %265 = vector.load %arg9[%c0_104, %c0_105, %c0_106] : memref<2x8x128xf32, #tpu.memory_space<vmem>>, vector<2x8x128xf32>
      tpu.vector_store %arg9[%c0_104, %c0_105, %c0_106], %264 {strides = array<i32>} : memref<2x8x128xf32, #tpu.memory_space<vmem>>, vector<2x8x128xf32>,
      %c0_107 = arith.constant 0 : index
      %c0_108 = arith.constant 0 : index
      %c0_109 = arith.constant 0 : index
      %266 = vector.load %arg3[%c0_107, %c0_108, %c0_109] : memref<2x8x128xf32, #tpu.memory_space<vmem>>, vector<2x8x128xf32>
      %c0_110 = arith.constant 0 : index
      %c0_111 = arith.constant 0 : index
      %c0_112 = arith.constant 0 : index
      %267 = vector.load %arg10[%c0_110, %c0_111, %c0_112] : memref<2x8x128xf32, #tpu.memory_space<vmem>>, vector<2x8x128xf32>
      tpu.vector_store %arg10[%c0_110, %c0_111, %c0_112], %266 {strides = array<i32>} : memref<2x8x128xf32, #tpu.memory_space<vmem>>, vector<2x8x128xf32>,
    } else {
    }
    %c0 = arith.constant 0 : index
    %c0_1 = arith.constant 0 : index
    %3 = vector.load %arg5[%c0, %c0_1] : memref<128x512xbf16, #tpu.memory_space<vmem>>, vector<128x512xbf16>
    %c0_2 = arith.constant 0 : index
    %c0_3 = arith.constant 0 : index
    %4 = vector.load %arg6[%c0_2, %c0_3] : memref<128x512xbf16, #tpu.memory_space<vmem>>, vector<128x512xbf16>
    %c0_4 = arith.constant 0 : index
    %c0_5 = arith.constant 0 : index
    %5 = vector.load %arg7[%c0_4, %c0_5] : memref<128x512xbf16, #tpu.memory_space<vmem>>, vector<128x512xbf16>
    %c0_6 = arith.constant 0 : index
    %c0_7 = arith.constant 0 : index
    %6 = vector.load %arg4[%c0_6, %c0_7] : memref<1x512xf32, #tpu.memory_space<vmem>>, vector<1x512xf32>
    %7 = vector.shape_cast %6 : vector<1x512xf32> to vector<1x512xf32>
    %8 = vector.broadcast %7 : vector<1x512xf32> to vector<8x512xf32>
    %c0_8 = arith.constant 0 : index
    %c0_9 = arith.constant 0 : index
    %9 = vector.load %arg8[%c0_8, %c0_9] : memref<1x512xf32, #tpu.memory_space<vmem>>, vector<1x512xf32>
    %10 = vector.shape_cast %9 : vector<1x512xf32> to vector<1x512xf32>
    %11 = vector.broadcast %10 : vector<1x512xf32> to vector<8x512xf32>
    %c0_10 = arith.constant 0 : index
    %c0_11 = arith.constant 0 : index
    %c0_12 = arith.constant 0 : index
    %12 = vector.load %arg9[%c0_10, %c0_11, %c0_12] : memref<2x8x128xf32, #tpu.memory_space<vmem>>, vector<1x8x128xf32>
    %13 = vector.shape_cast %12 : vector<1x8x128xf32> to vector<8x128xf32>
    %c0_13 = arith.constant 0 : index
    %c0_14 = arith.constant 0 : index
    %c0_15 = arith.constant 0 : index
    %14 = vector.load %arg10[%c0_13, %c0_14, %c0_15] : memref<2x8x128xf32, #tpu.memory_space<vmem>>, vector<1x8x128xf32>
    %15 = vector.shape_cast %14 : vector<1x8x128xf32> to vector<8x128xf32>
    %c1 = arith.constant 1 : index
    %c0_16 = arith.constant 0 : index
    %c0_17 = arith.constant 0 : index
    %16 = vector.load %arg9[%c1, %c0_16, %c0_17] : memref<2x8x128xf32, #tpu.memory_space<vmem>>, vector<1x8x128xf32>
    %17 = vector.shape_cast %16 : vector<1x8x128xf32> to vector<8x128xf32>
    %c1_18 = arith.constant 1 : index
    %c0_19 = arith.constant 0 : index
    %c0_20 = arith.constant 0 : index
    %18 = vector.load %arg10[%c1_18, %c0_19, %c0_20] : memref<2x8x128xf32, #tpu.memory_space<vmem>>, vector<1x8x128xf32>
    %19 = vector.shape_cast %18 : vector<1x8x128xf32> to vector<8x128xf32>
    %c0_i32_21 = arith.constant 0 : i32
    %20 = arith.truncf %17 : vector<8x128xf32> to vector<8x128xbf16>
    %cst = arith.constant dense<0.000000e+00> : vector<8x512xf32>
    %21 = tpu.matmul %20, %5, %cst {dimension_numbers = #tpu.dot_dimension_numbers<[1], [0], [0], [1], [0, 0, 1, 1], [], []>} : vector<8x128xbf16>, vector<128x512xbf16>, vector<8x512xf32> -> vector<8x512xf32>
    %22 = arith.index_cast %c0_i32_21 : i32 to index
    %c0_22 = arith.constant 0 : index
    %c0_23 = arith.constant 0 : index
    %23 = vector.load %arg1[%22, %c0_22, %c0_23] : memref<4x8x512xbf16, #tpu.memory_space<vmem>>, vector<1x8x512xbf16>
    %24 = vector.shape_cast %23 : vector<1x8x512xbf16> to vector<8x512xbf16>
    %25 = arith.extf %24 : vector<8x512xbf16> to vector<8x512xf32>
    %26 = arith.addf %25, %8 : vector<8x512xf32>
    %27 = arith.truncf %13 : vector<8x128xf32> to vector<8x128xbf16>
    %cst_24 = arith.constant dense<0.000000e+00> : vector<8x512xf32>
    %28 = tpu.matmul %27, %3, %cst_24 {dimension_numbers = #tpu.dot_dimension_numbers<[1], [0], [0], [1], [0, 0, 1, 1], [], []>} : vector<8x128xbf16>, vector<128x512xbf16>, vector<8x512xf32> -> vector<8x512xf32>
    %29 = arith.addf %26, %28 : vector<8x512xf32>
    %30 = math.tanh %29 : vector<8x512xf32>
    %31 = vector.extract_strided_slice %30 {offsets = [0, 0], sizes = [8, 128], strides = [1, 1]} : vector<8x512xf32> to vector<8x128xf32>
    %cst_25 = arith.constant 1.000000e+00 : f32
    %32 = vector.broadcast %cst_25 : f32 to vector<8x128xf32>
    %33 = arith.addf %31, %32 : vector<8x128xf32>
    %cst_26 = arith.constant 5.000000e-01 : f32
    %34 = vector.broadcast %cst_26 : f32 to vector<8x128xf32>
    %35 = arith.mulf %34, %33 : vector<8x128xf32>
    %36 = vector.extract_strided_slice %30 {offsets = [0, 128], sizes = [8, 128], strides = [1, 1]} : vector<8x512xf32> to vector<8x128xf32>
    %cst_27 = arith.constant 1.000000e+00 : f32
    %37 = vector.broadcast %cst_27 : f32 to vector<8x128xf32>
    %38 = arith.addf %36, %37 : vector<8x128xf32>
    %cst_28 = arith.constant 5.000000e-01 : f32
    %39 = vector.broadcast %cst_28 : f32 to vector<8x128xf32>
    %40 = arith.mulf %39, %38 : vector<8x128xf32>
    %41 = vector.extract_strided_slice %30 {offsets = [0, 256], sizes = [8, 128], strides = [1, 1]} : vector<8x512xf32> to vector<8x128xf32>
    %cst_29 = arith.constant 1.000000e+00 : f32
    %42 = vector.broadcast %cst_29 : f32 to vector<8x128xf32>
    %43 = arith.addf %41, %42 : vector<8x128xf32>
    %cst_30 = arith.constant 5.000000e-01 : f32
    %44 = vector.broadcast %cst_30 : f32 to vector<8x128xf32>
    %45 = arith.mulf %44, %43 : vector<8x128xf32>
    %46 = vector.extract_strided_slice %30 {offsets = [0, 384], sizes = [8, 128], strides = [1, 1]} : vector<8x512xf32> to vector<8x128xf32>
    %47 = arith.mulf %40, %15 : vector<8x128xf32>
    %48 = arith.mulf %35, %46 : vector<8x128xf32>
    %49 = arith.addf %47, %48 : vector<8x128xf32>
    %50 = math.tanh %49 : vector<8x128xf32>
    %51 = arith.mulf %45, %50 : vector<8x128xf32>
    %52 = arith.addf %21, %11 : vector<8x512xf32>
    %53 = arith.truncf %51 : vector<8x128xf32> to vector<8x128xbf16>
    %cst_31 = arith.constant dense<0.000000e+00> : vector<8x512xf32>
    %54 = tpu.matmul %53, %4, %cst_31 {dimension_numbers = #tpu.dot_dimension_numbers<[1], [0], [0], [1], [0, 0, 1, 1], [], []>} : vector<8x128xbf16>, vector<128x512xbf16>, vector<8x512xf32> -> vector<8x512xf32>
    %55 = arith.addf %52, %54 : vector<8x512xf32>
    %56 = math.tanh %55 : vector<8x512xf32>
    %57 = vector.extract_strided_slice %56 {offsets = [0, 0], sizes = [8, 128], strides = [1, 1]} : vector<8x512xf32> to vector<8x128xf32>
    %cst_32 = arith.constant 1.000000e+00 : f32
    %58 = vector.broadcast %cst_32 : f32 to vector<8x128xf32>
    %59 = arith.addf %57, %58 : vector<8x128xf32>
    %cst_33 = arith.constant 5.000000e-01 : f32
    %60 = vector.broadcast %cst_33 : f32 to vector<8x128xf32>
    %61 = arith.mulf %60, %59 : vector<8x128xf32>
    %62 = vector.extract_strided_slice %56 {offsets = [0, 128], sizes = [8, 128], strides = [1, 1]} : vector<8x512xf32> to vector<8x128xf32>
    %cst_34 = arith.constant 1.000000e+00 : f32
    %63 = vector.broadcast %cst_34 : f32 to vector<8x128xf32>
    %64 = arith.addf %62, %63 : vector<8x128xf32>
    %cst_35 = arith.constant 5.000000e-01 : f32
    %65 = vector.broadcast %cst_35 : f32 to vector<8x128xf32>
    %66 = arith.mulf %65, %64 : vector<8x128xf32>
    %67 = vector.extract_strided_slice %56 {offsets = [0, 256], sizes = [8, 128], strides = [1, 1]} : vector<8x512xf32> to vector<8x128xf32>
    %cst_36 = arith.constant 1.000000e+00 : f32
    %68 = vector.broadcast %cst_36 : f32 to vector<8x128xf32>
    %69 = arith.addf %67, %68 : vector<8x128xf32>
    %cst_37 = arith.constant 5.000000e-01 : f32
    %70 = vector.broadcast %cst_37 : f32 to vector<8x128xf32>
    %71 = arith.mulf %70, %69 : vector<8x128xf32>
    %72 = vector.extract_strided_slice %56 {offsets = [0, 384], sizes = [8, 128], strides = [1, 1]} : vector<8x512xf32> to vector<8x128xf32>
    %73 = arith.mulf %66, %19 : vector<8x128xf32>
    %74 = arith.mulf %61, %72 : vector<8x128xf32>
    %75 = arith.addf %73, %74 : vector<8x128xf32>
    %76 = math.tanh %75 : vector<8x128xf32>
    %77 = arith.mulf %71, %76 : vector<8x128xf32>
    %c1_i32 = arith.constant 1 : i32
    %78 = arith.truncf %77 : vector<8x128xf32> to vector<8x128xbf16>
    %cst_38 = arith.constant dense<0.000000e+00> : vector<8x512xf32>
    %79 = tpu.matmul %78, %5, %cst_38 {dimension_numbers = #tpu.dot_dimension_numbers<[1], [0], [0], [1], [0, 0, 1, 1], [], []>} : vector<8x128xbf16>, vector<128x512xbf16>, vector<8x512xf32> -> vector<8x512xf32>
    %80 = arith.index_cast %c1_i32 : i32 to index
    %c0_39 = arith.constant 0 : index
    %c0_40 = arith.constant 0 : index
    %81 = vector.load %arg1[%80, %c0_39, %c0_40] : memref<4x8x512xbf16, #tpu.memory_space<vmem>>, vector<1x8x512xbf16>
    %82 = vector.shape_cast %81 : vector<1x8x512xbf16> to vector<8x512xbf16>
    %83 = arith.extf %82 : vector<8x512xbf16> to vector<8x512xf32>
    %84 = arith.addf %83, %8 : vector<8x512xf32>
    %85 = arith.truncf %51 : vector<8x128xf32> to vector<8x128xbf16>
    %cst_41 = arith.constant dense<0.000000e+00> : vector<8x512xf32>
    %86 = tpu.matmul %85, %3, %cst_41 {dimension_numbers = #tpu.dot_dimension_numbers<[1], [0], [0], [1], [0, 0, 1, 1], [], []>} : vector<8x128xbf16>, vector<128x512xbf16>, vector<8x512xf32> -> vector<8x512xf32>
    %87 = arith.addf %84, %86 : vector<8x512xf32>
    %88 = math.tanh %87 : vector<8x512xf32>
    %89 = vector.extract_strided_slice %88 {offsets = [0, 0], sizes = [8, 128], strides = [1, 1]} : vector<8x512xf32> to vector<8x128xf32>
    %cst_42 = arith.constant 1.000000e+00 : f32
    %90 = vector.broadcast %cst_42 : f32 to vector<8x128xf32>
    %91 = arith.addf %89, %90 : vector<8x128xf32>
    %cst_43 = arith.constant 5.000000e-01 : f32
    %92 = vector.broadcast %cst_43 : f32 to vector<8x128xf32>
    %93 = arith.mulf %92, %91 : vector<8x128xf32>
    %94 = vector.extract_strided_slice %88 {offsets = [0, 128], sizes = [8, 128], strides = [1, 1]} : vector<8x512xf32> to vector<8x128xf32>
    %cst_44 = arith.constant 1.000000e+00 : f32
    %95 = vector.broadcast %cst_44 : f32 to vector<8x128xf32>
    %96 = arith.addf %94, %95 : vector<8x128xf32>
    %cst_45 = arith.constant 5.000000e-01 : f32
    %97 = vector.broadcast %cst_45 : f32 to vector<8x128xf32>
    %98 = arith.mulf %97, %96 : vector<8x128xf32>
    %99 = vector.extract_strided_slice %88 {offsets = [0, 256], sizes = [8, 128], strides = [1, 1]} : vector<8x512xf32> to vector<8x128xf32>
    %cst_46 = arith.constant 1.000000e+00 : f32
    %100 = vector.broadcast %cst_46 : f32 to vector<8x128xf32>
    %101 = arith.addf %99, %100 : vector<8x128xf32>
    %cst_47 = arith.constant 5.000000e-01 : f32
    %102 = vector.broadcast %cst_47 : f32 to vector<8x128xf32>
    %103 = arith.mulf %102, %101 : vector<8x128xf32>
    %104 = vector.extract_strided_slice %88 {offsets = [0, 384], sizes = [8, 128], strides = [1, 1]} : vector<8x512xf32> to vector<8x128xf32>
    %105 = arith.mulf %98, %49 : vector<8x128xf32>
    %106 = arith.mulf %93, %104 : vector<8x128xf32>
    %107 = arith.addf %105, %106 : vector<8x128xf32>
    %108 = math.tanh %107 : vector<8x128xf32>
    %109 = arith.mulf %103, %108 : vector<8x128xf32>
    %110 = arith.addf %79, %11 : vector<8x512xf32>
    %111 = arith.truncf %109 : vector<8x128xf32> to vector<8x128xbf16>
    %cst_48 = arith.constant dense<0.000000e+00> : vector<8x512xf32>
    %112 = tpu.matmul %111, %4, %cst_48 {dimension_numbers = #tpu.dot_dimension_numbers<[1], [0], [0], [1], [0, 0, 1, 1], [], []>} : vector<8x128xbf16>, vector<128x512xbf16>, vector<8x512xf32> -> vector<8x512xf32>
    %113 = arith.addf %110, %112 : vector<8x512xf32>
    %114 = math.tanh %113 : vector<8x512xf32>
    %115 = vector.extract_strided_slice %114 {offsets = [0, 0], sizes = [8, 128], strides = [1, 1]} : vector<8x512xf32> to vector<8x128xf32>
    %cst_49 = arith.constant 1.000000e+00 : f32
    %116 = vector.broadcast %cst_49 : f32 to vector<8x128xf32>
    %117 = arith.addf %115, %116 : vector<8x128xf32>
    %cst_50 = arith.constant 5.000000e-01 : f32
    %118 = vector.broadcast %cst_50 : f32 to vector<8x128xf32>
    %119 = arith.mulf %118, %117 : vector<8x128xf32>
    %120 = vector.extract_strided_slice %114 {offsets = [0, 128], sizes = [8, 128], strides = [1, 1]} : vector<8x512xf32> to vector<8x128xf32>
    %cst_51 = arith.constant 1.000000e+00 : f32
    %121 = vector.broadcast %cst_51 : f32 to vector<8x128xf32>
    %122 = arith.addf %120, %121 : vector<8x128xf32>
    %cst_52 = arith.constant 5.000000e-01 : f32
    %123 = vector.broadcast %cst_52 : f32 to vector<8x128xf32>
    %124 = arith.mulf %123, %122 : vector<8x128xf32>
    %125 = vector.extract_strided_slice %114 {offsets = [0, 256], sizes = [8, 128], strides = [1, 1]} : vector<8x512xf32> to vector<8x128xf32>
    %cst_53 = arith.constant 1.000000e+00 : f32
    %126 = vector.broadcast %cst_53 : f32 to vector<8x128xf32>
    %127 = arith.addf %125, %126 : vector<8x128xf32>
    %cst_54 = arith.constant 5.000000e-01 : f32
    %128 = vector.broadcast %cst_54 : f32 to vector<8x128xf32>
    %129 = arith.mulf %128, %127 : vector<8x128xf32>
    %130 = vector.extract_strided_slice %114 {offsets = [0, 384], sizes = [8, 128], strides = [1, 1]} : vector<8x512xf32> to vector<8x128xf32>
    %131 = arith.mulf %124, %75 : vector<8x128xf32>
    %132 = arith.mulf %119, %130 : vector<8x128xf32>
    %133 = arith.addf %131, %132 : vector<8x128xf32>
    %134 = math.tanh %133 : vector<8x128xf32>
    %135 = arith.mulf %129, %134 : vector<8x128xf32>
    %c2_i32 = arith.constant 2 : i32
    %136 = arith.truncf %135 : vector<8x128xf32> to vector<8x128xbf16>
    %cst_55 = arith.constant dense<0.000000e+00> : vector<8x512xf32>
    %137 = tpu.matmul %136, %5, %cst_55 {dimension_numbers = #tpu.dot_dimension_numbers<[1], [0], [0], [1], [0, 0, 1, 1], [], []>} : vector<8x128xbf16>, vector<128x512xbf16>, vector<8x512xf32> -> vector<8x512xf32>
    %138 = arith.index_cast %c2_i32 : i32 to index
    %c0_56 = arith.constant 0 : index
    %c0_57 = arith.constant 0 : index
    %139 = vector.load %arg1[%138, %c0_56, %c0_57] : memref<4x8x512xbf16, #tpu.memory_space<vmem>>, vector<1x8x512xbf16>
    %140 = vector.shape_cast %139 : vector<1x8x512xbf16> to vector<8x512xbf16>
    %141 = arith.extf %140 : vector<8x512xbf16> to vector<8x512xf32>
    %142 = arith.addf %141, %8 : vector<8x512xf32>
    %143 = arith.truncf %109 : vector<8x128xf32> to vector<8x128xbf16>
    %cst_58 = arith.constant dense<0.000000e+00> : vector<8x512xf32>
    %144 = tpu.matmul %143, %3, %cst_58 {dimension_numbers = #tpu.dot_dimension_numbers<[1], [0], [0], [1], [0, 0, 1, 1], [], []>} : vector<8x128xbf16>, vector<128x512xbf16>, vector<8x512xf32> -> vector<8x512xf32>
    %145 = arith.addf %142, %144 : vector<8x512xf32>
    %146 = math.tanh %145 : vector<8x512xf32>
    %147 = vector.extract_strided_slice %146 {offsets = [0, 0], sizes = [8, 128], strides = [1, 1]} : vector<8x512xf32> to vector<8x128xf32>
    %cst_59 = arith.constant 1.000000e+00 : f32
    %148 = vector.broadcast %cst_59 : f32 to vector<8x128xf32>
    %149 = arith.addf %147, %148 : vector<8x128xf32>
    %cst_60 = arith.constant 5.000000e-01 : f32
    %150 = vector.broadcast %cst_60 : f32 to vector<8x128xf32>
    %151 = arith.mulf %150, %149 : vector<8x128xf32>
    %152 = vector.extract_strided_slice %146 {offsets = [0, 128], sizes = [8, 128], strides = [1, 1]} : vector<8x512xf32> to vector<8x128xf32>
    %cst_61 = arith.constant 1.000000e+00 : f32
    %153 = vector.broadcast %cst_61 : f32 to vector<8x128xf32>
    %154 = arith.addf %152, %153 : vector<8x128xf32>
    %cst_62 = arith.constant 5.000000e-01 : f32
    %155 = vector.broadcast %cst_62 : f32 to vector<8x128xf32>
    %156 = arith.mulf %155, %154 : vector<8x128xf32>
    %157 = vector.extract_strided_slice %146 {offsets = [0, 256], sizes = [8, 128], strides = [1, 1]} : vector<8x512xf32> to vector<8x128xf32>
    %cst_63 = arith.constant 1.000000e+00 : f32
    %158 = vector.broadcast %cst_63 : f32 to vector<8x128xf32>
    %159 = arith.addf %157, %158 : vector<8x128xf32>
    %cst_64 = arith.constant 5.000000e-01 : f32
    %160 = vector.broadcast %cst_64 : f32 to vector<8x128xf32>
    %161 = arith.mulf %160, %159 : vector<8x128xf32>
    %162 = vector.extract_strided_slice %146 {offsets = [0, 384], sizes = [8, 128], strides = [1, 1]} : vector<8x512xf32> to vector<8x128xf32>
    %163 = arith.mulf %156, %107 : vector<8x128xf32>
    %164 = arith.mulf %151, %162 : vector<8x128xf32>
    %165 = arith.addf %163, %164 : vector<8x128xf32>
    %166 = math.tanh %165 : vector<8x128xf32>
    %167 = arith.mulf %161, %166 : vector<8x128xf32>
    %168 = arith.addf %137, %11 : vector<8x512xf32>
    %169 = arith.truncf %167 : vector<8x128xf32> to vector<8x128xbf16>
    %cst_65 = arith.constant dense<0.000000e+00> : vector<8x512xf32>
    %170 = tpu.matmul %169, %4, %cst_65 {dimension_numbers = #tpu.dot_dimension_numbers<[1], [0], [0], [1], [0, 0, 1, 1], [], []>} : vector<8x128xbf16>, vector<128x512xbf16>, vector<8x512xf32> -> vector<8x512xf32>
    %171 = arith.addf %168, %170 : vector<8x512xf32>
    %172 = math.tanh %171 : vector<8x512xf32>
    %173 = vector.extract_strided_slice %172 {offsets = [0, 0], sizes = [8, 128], strides = [1, 1]} : vector<8x512xf32> to vector<8x128xf32>
    %cst_66 = arith.constant 1.000000e+00 : f32
    %174 = vector.broadcast %cst_66 : f32 to vector<8x128xf32>
    %175 = arith.addf %173, %174 : vector<8x128xf32>
    %cst_67 = arith.constant 5.000000e-01 : f32
    %176 = vector.broadcast %cst_67 : f32 to vector<8x128xf32>
    %177 = arith.mulf %176, %175 : vector<8x128xf32>
    %178 = vector.extract_strided_slice %172 {offsets = [0, 128], sizes = [8, 128], strides = [1, 1]} : vector<8x512xf32> to vector<8x128xf32>
    %cst_68 = arith.constant 1.000000e+00 : f32
    %179 = vector.broadcast %cst_68 : f32 to vector<8x128xf32>
    %180 = arith.addf %178, %179 : vector<8x128xf32>
    %cst_69 = arith.constant 5.000000e-01 : f32
    %181 = vector.broadcast %cst_69 : f32 to vector<8x128xf32>
    %182 = arith.mulf %181, %180 : vector<8x128xf32>
    %183 = vector.extract_strided_slice %172 {offsets = [0, 256], sizes = [8, 128], strides = [1, 1]} : vector<8x512xf32> to vector<8x128xf32>
    %cst_70 = arith.constant 1.000000e+00 : f32
    %184 = vector.broadcast %cst_70 : f32 to vector<8x128xf32>
    %185 = arith.addf %183, %184 : vector<8x128xf32>
    %cst_71 = arith.constant 5.000000e-01 : f32
    %186 = vector.broadcast %cst_71 : f32 to vector<8x128xf32>
    %187 = arith.mulf %186, %185 : vector<8x128xf32>
    %188 = vector.extract_strided_slice %172 {offsets = [0, 384], sizes = [8, 128], strides = [1, 1]} : vector<8x512xf32> to vector<8x128xf32>
    %189 = arith.mulf %182, %133 : vector<8x128xf32>
    %190 = arith.mulf %177, %188 : vector<8x128xf32>
    %191 = arith.addf %189, %190 : vector<8x128xf32>
    %192 = math.tanh %191 : vector<8x128xf32>
    %193 = arith.mulf %187, %192 : vector<8x128xf32>
    %c3_i32 = arith.constant 3 : i32
    %194 = arith.truncf %193 : vector<8x128xf32> to vector<8x128xbf16>
    %cst_72 = arith.constant dense<0.000000e+00> : vector<8x512xf32>
    %195 = tpu.matmul %194, %5, %cst_72 {dimension_numbers = #tpu.dot_dimension_numbers<[1], [0], [0], [1], [0, 0, 1, 1], [], []>} : vector<8x128xbf16>, vector<128x512xbf16>, vector<8x512xf32> -> vector<8x512xf32>
    %196 = arith.index_cast %c3_i32 : i32 to index
    %c0_73 = arith.constant 0 : index
    %c0_74 = arith.constant 0 : index
    %197 = vector.load %arg1[%196, %c0_73, %c0_74] : memref<4x8x512xbf16, #tpu.memory_space<vmem>>, vector<1x8x512xbf16>
    %198 = vector.shape_cast %197 : vector<1x8x512xbf16> to vector<8x512xbf16>
    %199 = arith.extf %198 : vector<8x512xbf16> to vector<8x512xf32>
    %200 = arith.addf %199, %8 : vector<8x512xf32>
    %201 = arith.truncf %167 : vector<8x128xf32> to vector<8x128xbf16>
    %cst_75 = arith.constant dense<0.000000e+00> : vector<8x512xf32>
    %202 = tpu.matmul %201, %3, %cst_75 {dimension_numbers = #tpu.dot_dimension_numbers<[1], [0], [0], [1], [0, 0, 1, 1], [], []>} : vector<8x128xbf16>, vector<128x512xbf16>, vector<8x512xf32> -> vector<8x512xf32>
    %203 = arith.addf %200, %202 : vector<8x512xf32>
    %204 = math.tanh %203 : vector<8x512xf32>
    %205 = vector.extract_strided_slice %204 {offsets = [0, 0], sizes = [8, 128], strides = [1, 1]} : vector<8x512xf32> to vector<8x128xf32>
    %cst_76 = arith.constant 1.000000e+00 : f32
    %206 = vector.broadcast %cst_76 : f32 to vector<8x128xf32>
    %207 = arith.addf %205, %206 : vector<8x128xf32>
    %cst_77 = arith.constant 5.000000e-01 : f32
    %208 = vector.broadcast %cst_77 : f32 to vector<8x128xf32>
    %209 = arith.mulf %208, %207 : vector<8x128xf32>
    %210 = vector.extract_strided_slice %204 {offsets = [0, 128], sizes = [8, 128], strides = [1, 1]} : vector<8x512xf32> to vector<8x128xf32>
    %cst_78 = arith.constant 1.000000e+00 : f32
    %211 = vector.broadcast %cst_78 : f32 to vector<8x128xf32>
    %212 = arith.addf %210, %211 : vector<8x128xf32>
    %cst_79 = arith.constant 5.000000e-01 : f32
    %213 = vector.broadcast %cst_79 : f32 to vector<8x128xf32>
    %214 = arith.mulf %213, %212 : vector<8x128xf32>
    %215 = vector.extract_strided_slice %204 {offsets = [0, 256], sizes = [8, 128], strides = [1, 1]} : vector<8x512xf32> to vector<8x128xf32>
    %cst_80 = arith.constant 1.000000e+00 : f32
    %216 = vector.broadcast %cst_80 : f32 to vector<8x128xf32>
    %217 = arith.addf %215, %216 : vector<8x128xf32>
    %cst_81 = arith.constant 5.000000e-01 : f32
    %218 = vector.broadcast %cst_81 : f32 to vector<8x128xf32>
    %219 = arith.mulf %218, %217 : vector<8x128xf32>
    %220 = vector.extract_strided_slice %204 {offsets = [0, 384], sizes = [8, 128], strides = [1, 1]} : vector<8x512xf32> to vector<8x128xf32>
    %221 = arith.mulf %214, %165 : vector<8x128xf32>
    %222 = arith.mulf %209, %220 : vector<8x128xf32>
    %223 = arith.addf %221, %222 : vector<8x128xf32>
    %224 = math.tanh %223 : vector<8x128xf32>
    %225 = arith.mulf %219, %224 : vector<8x128xf32>
    %226 = arith.addf %195, %11 : vector<8x512xf32>
    %227 = arith.truncf %225 : vector<8x128xf32> to vector<8x128xbf16>
    %cst_82 = arith.constant dense<0.000000e+00> : vector<8x512xf32>
    %228 = tpu.matmul %227, %4, %cst_82 {dimension_numbers = #tpu.dot_dimension_numbers<[1], [0], [0], [1], [0, 0, 1, 1], [], []>} : vector<8x128xbf16>, vector<128x512xbf16>, vector<8x512xf32> -> vector<8x512xf32>
    %229 = arith.addf %226, %228 : vector<8x512xf32>
    %230 = math.tanh %229 : vector<8x512xf32>
    %231 = vector.extract_strided_slice %230 {offsets = [0, 0], sizes = [8, 128], strides = [1, 1]} : vector<8x512xf32> to vector<8x128xf32>
    %cst_83 = arith.constant 1.000000e+00 : f32
    %232 = vector.broadcast %cst_83 : f32 to vector<8x128xf32>
    %233 = arith.addf %231, %232 : vector<8x128xf32>
    %cst_84 = arith.constant 5.000000e-01 : f32
    %234 = vector.broadcast %cst_84 : f32 to vector<8x128xf32>
    %235 = arith.mulf %234, %233 : vector<8x128xf32>
    %236 = vector.extract_strided_slice %230 {offsets = [0, 128], sizes = [8, 128], strides = [1, 1]} : vector<8x512xf32> to vector<8x128xf32>
    %cst_85 = arith.constant 1.000000e+00 : f32
    %237 = vector.broadcast %cst_85 : f32 to vector<8x128xf32>
    %238 = arith.addf %236, %237 : vector<8x128xf32>
    %cst_86 = arith.constant 5.000000e-01 : f32
    %239 = vector.broadcast %cst_86 : f32 to vector<8x128xf32>
    %240 = arith.mulf %239, %238 : vector<8x128xf32>
    %241 = vector.extract_strided_slice %230 {offsets = [0, 256], sizes = [8, 128], strides = [1, 1]} : vector<8x512xf32> to vector<8x128xf32>
    %cst_87 = arith.constant 1.000000e+00 : f32
    %242 = vector.broadcast %cst_87 : f32 to vector<8x128xf32>
    %243 = arith.addf %241, %242 : vector<8x128xf32>
    %cst_88 = arith.constant 5.000000e-01 : f32
    %244 = vector.broadcast %cst_88 : f32 to vector<8x128xf32>
    %245 = arith.mulf %244, %243 : vector<8x128xf32>
    %246 = vector.extract_strided_slice %230 {offsets = [0, 384], sizes = [8, 128], strides = [1, 1]} : vector<8x512xf32> to vector<8x128xf32>
    %247 = arith.mulf %240, %191 : vector<8x128xf32>
    %248 = arith.mulf %235, %246 : vector<8x128xf32>
    %249 = arith.addf %247, %248 : vector<8x128xf32>
    %250 = math.tanh %249 : vector<8x128xf32>
    %251 = arith.mulf %245, %250 : vector<8x128xf32>
    %c4_i32 = arith.constant 4 : i32
    %c0_89 = arith.constant 0 : index
    %c0_90 = arith.constant 0 : index
    %c0_91 = arith.constant 0 : index
    %252 = vector.load %arg9[%c0_89, %c0_90, %c0_91] : memref<2x8x128xf32, #tpu.memory_space<vmem>>, vector<1x8x128xf32>
    %253 = vector.shape_cast %252 : vector<1x8x128xf32> to vector<8x128xf32>
    %254 = vector.shape_cast %225 : vector<8x128xf32> to vector<1x8x128xf32>
    tpu.vector_store %arg9[%c0_89, %c0_90, %c0_91], %254 {strides = array<i32>} : memref<2x8x128xf32, #tpu.memory_space<vmem>>, vector<1x8x128xf32>,
    %c1_92 = arith.constant 1 : index
    %c0_93 = arith.constant 0 : index
    %c0_94 = arith.constant 0 : index
    %255 = vector.load %arg9[%c1_92, %c0_93, %c0_94] : memref<2x8x128xf32, #tpu.memory_space<vmem>>, vector<1x8x128xf32>
    %256 = vector.shape_cast %255 : vector<1x8x128xf32> to vector<8x128xf32>
    %257 = vector.shape_cast %251 : vector<8x128xf32> to vector<1x8x128xf32>
    tpu.vector_store %arg9[%c1_92, %c0_93, %c0_94], %257 {strides = array<i32>} : memref<2x8x128xf32, #tpu.memory_space<vmem>>, vector<1x8x128xf32>,
    %c0_95 = arith.constant 0 : index
    %c0_96 = arith.constant 0 : index
    %c0_97 = arith.constant 0 : index
    %258 = vector.load %arg10[%c0_95, %c0_96, %c0_97] : memref<2x8x128xf32, #tpu.memory_space<vmem>>, vector<1x8x128xf32>
    %259 = vector.shape_cast %258 : vector<1x8x128xf32> to vector<8x128xf32>
    %260 = vector.shape_cast %223 : vector<8x128xf32> to vector<1x8x128xf32>
    tpu.vector_store %arg10[%c0_95, %c0_96, %c0_97], %260 {strides = array<i32>} : memref<2x8x128xf32, #tpu.memory_space<vmem>>, vector<1x8x128xf32>,
    %c1_98 = arith.constant 1 : index
    %c0_99 = arith.constant 0 : index
    %c0_100 = arith.constant 0 : index
    %261 = vector.load %arg10[%c1_98, %c0_99, %c0_100] : memref<2x8x128xf32, #tpu.memory_space<vmem>>, vector<1x8x128xf32>
    %262 = vector.shape_cast %261 : vector<1x8x128xf32> to vector<8x128xf32>
    %263 = vector.shape_cast %249 : vector<8x128xf32> to vector<1x8x128xf32>
    tpu.vector_store %arg10[%c1_98, %c0_99, %c0_100], %263 {strides = array<i32>} : memref<2x8x128xf32, #tpu.memory_space<vmem>>, vector<1x8x128xf32>,
    return
  }
  func.func @transform_0(%arg0: i32) -> (i32, i32, i32) {
    %c0_i32 = arith.constant 0 : i32
    %c0_i32_0 = arith.constant 0 : i32
    %c0_i32_1 = arith.constant 0 : i32
    return %arg0, %c0_i32, %c0_i32_0 : i32, i32, i32
  }
  func.func @transform_1(%arg0: i32) -> (i32, i32, i32) {
    %c0_i32 = arith.constant 0 : i32
    %c0_i32_0 = arith.constant 0 : i32
    %c0_i32_1 = arith.constant 0 : i32
    %c0_i32_2 = arith.constant 0 : i32
    return %c0_i32, %c0_i32_0, %c0_i32_1 : i32, i32, i32
  }
  func.func @transform_2(%arg0: i32) -> (i32, i32, i32) {
    %c0_i32 = arith.constant 0 : i32
    %c0_i32_0 = arith.constant 0 : i32
    %c0_i32_1 = arith.constant 0 : i32
    %c0_i32_2 = arith.constant 0 : i32
    return %c0_i32, %c0_i32_0, %c0_i32_1 : i32, i32, i32
  }
  func.func @transform_3(%arg0: i32) -> (i32, i32) {
    %c0_i32 = arith.constant 0 : i32
    %c0_i32_0 = arith.constant 0 : i32
    %c0_i32_1 = arith.constant 0 : i32
    return %c0_i32, %c0_i32_0 : i32, i32
  }
  func.func @transform_4(%arg0: i32) -> (i32, i32) {
    %c0_i32 = arith.constant 0 : i32
    %c0_i32_0 = arith.constant 0 : i32
    %c0_i32_1 = arith.constant 0 : i32
    return %c0_i32, %c0_i32_0 : i32, i32
  }
  func.func @transform_5(%arg0: i32) -> (i32, i32) {
    %c0_i32 = arith.constant 0 : i32
    %c0_i32_0 = arith.constant 0 : i32
    %c0_i32_1 = arith.constant 0 : i32
    return %c0_i32, %c0_i32_0 : i32, i32
  }
  func.func @transform_6(%arg0: i32) -> (i32, i32) {
    %c0_i32 = arith.constant 0 : i32
    %c0_i32_0 = arith.constant 0 : i32
    %c0_i32_1 = arith.constant 0 : i32
    return %c0_i32, %c0_i32_0 : i32, i32
  }
  func.func @transform_7(%arg0: i32) -> (i32, i32) {
    %c0_i32 = arith.constant 0 : i32
    %c0_i32_0 = arith.constant 0 : i32
    %c0_i32_1 = arith.constant 0 : i32
    return %c0_i32, %c0_i32_0 : i32, i32
  }
  func.func @transform_8(%arg0: i32) -> (i32, i32, i32) {
    %c0_i32 = arith.constant 0 : i32
    %c0_i32_0 = arith.constant 0 : i32
    %c0_i32_1 = arith.constant 0 : i32
    %c0_i32_2 = arith.constant 0 : i32
    return %c0_i32, %c0_i32_0, %c0_i32_1 : i32, i32, i32
  }
  func.func @transform_9(%arg0: i32) -> (i32, i32, i32) {
    %c0_i32 = arith.constant 0 : i32
    %c0_i32_0 = arith.constant 0 : i32
    %c0_i32_1 = arith.constant 0 : i32
    %c0_i32_2 = arith.constant 0 : i32
    return %c0_i32, %c0_i32_0, %c0_i32_1 : i32, i32, i32
  }
}

</mosaic_0001>

<bundles_post_ra>
// kernel: sentiment_rnn_forward.1
= control target key start
LH: loop header
LB: loop body
LE: loop exit
PB: predicated region body
PF: predicated region fallthrough
CT: control target
= control target key end

     0   :  { %15 = vsyncpa [#allocation3], 0  ;;  %s2802_s30 = smov 0   ;;  %s4117_s0 = inlined_call_operand.vmem [shape: bf16[8,8,512], index: 0, kind: input, shape index: {}]   ;;  %s4118_s1 = inlined_call_operand.vmem [shape: f32[2,8,128], index: 1, kind: input, shape index: {}]   ;;  %s4119_s2 = inlined_call_operand.vmem [shape: f32[2,8,128], index: 2, kind: input, shape index: {}]   ;;  %s4120_s3 = inlined_call_operand.vmem [shape: f32[1,512], index: 3, kind: input, shape index: {}]   ;;  %s4121_s4 = inlined_call_operand.vmem [shape: bf16[128,512], index: 4, kind: input, shape index: {}]   ;;  %s4122_s5 = inlined_call_operand.vmem [shape: bf16[128,512], index: 5, kind: input, shape index: {}]   ;;  %s4123_s6 = inlined_call_operand.vmem [shape: bf16[128,512], index: 6, kind: input, shape index: {}]   ;;  %s4124_s7 = inlined_call_operand.vmem [shape: f32[1,512], index: 7, kind: input, shape index: {}]   ;;  %s4125_s8 = inlined_call_operand.vmem [shape: f32[2,8,128], index: 8, kind: output, shape index: {0}]   ;;  %s4126_s9 = inlined_call_operand.hbm [shape: f32[2,8,128], index: 9, kind: output, shape index: {1}]  }
   0x1 LB: > { %s2808_s10 = sadd.s32 4294967295, %s2746_s30   ;;  %p2210_p0 = scmp.ge.s32.totalorder %s2746_s30, 1  ;;  %s2746_s30 = sphi %s2802_s30, %s21_s30  }
   0x2   : > { %p283_p1 = scmp.lt.s32.totalorder %s2746_s30, 3 }
   0x4   : > { %p284_p2 = pnand %p2210_p0, %p283_p1 }
   0x6   : > { %287 = sbr.rel (%p284_p2) target bundleno = 1407 (0x57f), region = 52 }
   0xd   : > { %s2211_s11 = sshll.u32 %s2808_s10, 2  ;;  %p2214_p4 = scmp.ne.s32.totalorder %s2808_s10, 0 }
   0xe   : > { %p316_p3 = scmp.lt.s32.totalorder %s2211_s11, 7  ;;  %v327_v0 = vld [vmem:[%s4118_s1] sm:$0xff] (!%p2214_p4)  ;;  %v328_v1 = vld [vmem:[%s4118_s1 + $0x8] sm:$0xff] (!%p2214_p4) }
   0xf   : > { %326 = sbr.rel (%p2214_p4) target bundleno = 22 (0x16), region = 56  ;;  %v331_v2 = vld [vmem:[%s4119_s2] sm:$0xff] (!%p2214_p4)  ;;  %329 = vst [vmem:[%s4125_s8] sm:$0xff] (!%p2214_p4), %v327_v0  ;;  %330 = vst [vmem:[%s4125_s8 + $0x8] sm:$0xff] (!%p2214_p4), %v328_v1  ;;  %v332_v3 = vld [vmem:[%s4119_s2 + $0x8] sm:$0xff] (!%p2214_p4) }
  0x10   : > { %s4453_s11 = smov (!%p316_p3, %s2211_s11), 7  ;;  %333 = vst [vmem:[#allocation2] sm:$0xff] (!%p2214_p4), %v331_v2  ;;  %334 = vst [vmem:[#allocation2 + $0x8] sm:$0xff] (!%p2214_p4), %v332_v3 }
  0x11   : > { %s2323_s12 = sshll.u32 %s4453_s11, 4 }
  0x12   : > { %s2816_s15 = scalar_lea.vmem %s4117_s0, %s2323_s12 }
  0x16 PF: > { %v2840_v4 = vld [vmem:[%s4121_s4 + $0x4] ss:$16 sps:$4 sm:$0xff]   ;;  %v2845_v5 = vld [vmem:[%s4121_s4] ss:$16 sps:$4 sm:$0xff]   ;;  %v4127_v6 = vmov 0   ;;  %s2749_s22 = smov [#allocation2]  }
  0x17   : > { %685 = vmatprep.mubr.bf16.mxu0 %v4127_v6  ;;  %726 = vmatprep.mubr.bf16.mxu1 %v4127_v6  ;;  %v2853_v7 = vld [vmem:[%s4121_s4 + $0xc] ss:$16 sps:$4 sm:$0xff]   ;;  %v2858_v8 = vld [vmem:[%s4121_s4 + $0x8] ss:$16 sps:$4 sm:$0xff]   ;;  %v2864_v9 = vld [vmem:[%s4121_s4 + $0x24] ss:$16 sps:$4 sm:$0xff]  }
  0x18   : > { %653 = vmatprep.subr.bf16.mxu0 %v2840_v4  ;;  %v2869_v10 = vld [vmem:[%s4121_s4 + $0x20] ss:$16 sps:$4 sm:$0xff]   ;;  %694 = vmatprep.subr.bf16.mxu1 %v2853_v7  ;;  %v2875_v11 = vld [vmem:[%s4121_s4 + $0x2c] ss:$16 sps:$4 sm:$0xff]   ;;  %v2882_v12 = vld [vmem:[%s4121_s4 + $0x28] ss:$16 sps:$4 sm:$0xff]  }
  0x19   : > { %654 = vmatpush1.bf16.msra.mxu0 %v2845_v5  ;;  %695 = vmatpush1.bf16.msra.mxu1 %v2858_v8  ;;  %v2888_v13 = vld [vmem:[%s4121_s4 + $0x44] ss:$16 sps:$4 sm:$0xff]   ;;  %v2894_v14 = vld [vmem:[%s4121_s4 + $0x40] ss:$16 sps:$4 sm:$0xff]   ;;  %v2899_v15 = vld [vmem:[%s4121_s4 + $0x4c] ss:$16 sps:$4 sm:$0xff]  }
  0x1a   : > { %655 = vmatprep.subr.bf16.mxu0 %v2864_v9  ;;  %696 = vmatprep.subr.bf16.mxu1 %v2875_v11  ;;  %v2905_v16 = vld [vmem:[%s4121_s4 + $0x64] ss:$16 sps:$4 sm:$0xff]   ;;  %v2911_v17 = vld [vmem:[%s4121_s4 + $0x48] ss:$16 sps:$4 sm:$0xff]   ;;  %v2917_v18 = vld [vmem:[%s4121_s4 + $0x6c] ss:$16 sps:$4 sm:$0xff]  }
  0x1b   : > { %v2923_v19 = vld [vmem:[%s4121_s4 + $0x60] ss:$16 sps:$4 sm:$0xff]   ;;  %v2929_v20 = vld [vmem:[%s4121_s4 + $0x84] ss:$16 sps:$4 sm:$0xff]   ;;  %v2935_v21 = vld [vmem:[%s4121_s4 + $0x68] ss:$16 sps:$4 sm:$0xff]  }
  0x1c   : > { %v2941_v22 = vld [vmem:[%s4121_s4 + $0x8c] ss:$16 sps:$4 sm:$0xff]   ;;  %v2947_v23 = vld [vmem:[%s4121_s4 + $0x80] ss:$16 sps:$4 sm:$0xff]   ;;  %v2953_v24 = vld [vmem:[%s4121_s4 + $0xa4] ss:$16 sps:$4 sm:$0xff]  }
  0x1d   : > { %656 = vmatpush1.bf16.msra.mxu0 %v2869_v10  ;;  %697 = vmatpush1.bf16.msra.mxu1 %v2882_v12  ;;  %v2959_v25 = vld [vmem:[%s4121_s4 + $0x88] ss:$16 sps:$4 sm:$0xff]   ;;  %v2965_v26 = vld [vmem:[%s4121_s4 + $0xac] ss:$16 sps:$4 sm:$0xff]   ;;  %v2971_v27 = vld [vmem:[%s4121_s4 + $0xa0] ss:$16 sps:$4 sm:$0xff]  }
  0x1e   : > { %657 = vmatprep.subr.bf16.mxu0 %v2888_v13  ;;  %698 = vmatprep.subr.bf16.mxu1 %v2899_v15  ;;  %v2977_v28 = vld [vmem:[%s4121_s4 + $0xc4] ss:$16 sps:$4 sm:$0xff]   ;;  %v2983_v29 = vld [vmem:[%s4121_s4 + $0xa8] ss:$16 sps:$4 sm:$0xff]   ;;  %v2989_v30 = vld [vmem:[%s4121_s4 + $0xcc] ss:$16 sps:$4 sm:$0xff]  }
  0x1f   : > { %v2995_v31 = vld [vmem:[%s4121_s4 + $0xc0] ss:$16 sps:$4 sm:$0xff]   ;;  %v3001_v32 = vld [vmem:[%s4121_s4 + $0xe4] ss:$16 sps:$4 sm:$0xff]   ;;  %v3007_v33 = vld [vmem:[%s4121_s4 + $0xc8] ss:$16 sps:$4 sm:$0xff]  }
  0x20   : > { %v3013_v34 = vld [vmem:[%s4121_s4 + $0xe0] ss:$16 sps:$4 sm:$0xff]   ;;  %v3018_v35 = vld [vmem:[%s4121_s4 + $0xec] ss:$16 sps:$4 sm:$0xff]   ;;  %v3028_v37 = vld [vmem:[%s4123_s6 + $0x4] ss:$16 sps:$4 sm:$0xff]  }
  0x21   : > { %658 = vmatpush1.bf16.msra.mxu0 %v2894_v14  ;;  %699 = vmatpush1.bf16.msra.mxu1 %v2911_v17  ;;  %v475_v36 = vld [vmem:[%s4125_s8] sm:$0xff]  ;;  %v3034_v38 = vld [vmem:[%s4121_s4 + $0xe8] ss:$16 sps:$4 sm:$0xff]   ;;  %v3040_v40 = vld [vmem:[%s4123_s6 + $0xc] ss:$16 sps:$4 sm:$0xff]   ;;  %s2162_s23 = sshll.u32 %s2749_s22, 4  ;;  %s2163_s23 = int_to_ptr.vmem [resolvable:$true] %s2162_s23 }
  0x22   : > { %659 = vmatprep.subr.bf16.mxu0 %v2905_v16  ;;  %700 = vmatprep.subr.bf16.mxu1 %v2917_v18  ;;  %v492_v39 = vpack.c.bf16 %v475_v36, %v475_v36  ;;  %v3046_v41 = vld [vmem:[%s4123_s6] ss:$16 sps:$4 sm:$0xff]   ;;  %v3052_v42 = vld [vmem:[%s4123_s6 + $0x24] ss:$16 sps:$4 sm:$0xff]   ;;  %v3058_v43 = vld [vmem:[%s4123_s6 + $0x8] ss:$16 sps:$4 sm:$0xff]   ;;  %p2717_p9 = scmp.lt.s32.totalorder %s2163_s23, %s2163_s23 }
  0x23   : > { %v3064_v44 = vld [vmem:[%s4123_s6 + $0x2c] ss:$16 sps:$4 sm:$0xff]   ;;  %v3070_v45 = vld [vmem:[%s4123_s6 + $0x20] ss:$16 sps:$4 sm:$0xff]   ;;  %v3077_v46 = vld [vmem:[%s4123_s6 + $0x44] ss:$16 sps:$4 sm:$0xff]  }
  0x24   : > { %v3083_v47 = vld [vmem:[%s4123_s6 + $0x28] ss:$16 sps:$4 sm:$0xff]   ;;  %v3090_v48 = vld [vmem:[%s4123_s6 + $0x4c] ss:$16 sps:$4 sm:$0xff]   ;;  %v3096_v49 = vld [vmem:[%s4123_s6 + $0x40] ss:$16 sps:$4 sm:$0xff]  }
  0x25   : > { %660 = vmatpush1.bf16.msra.mxu0 %v2923_v19  ;;  %701 = vmatpush1.bf16.msra.mxu1 %v2935_v21  ;;  %v3102_v50 = vld [vmem:[%s4123_s6 + $0x48] ss:$16 sps:$4 sm:$0xff]   ;;  %v3107_v51 = vld [vmem:[%s4123_s6 + $0x64] ss:$16 sps:$4 sm:$0xff]   ;;  %v3112_v52 = vld [vmem:[%s4123_s6 + $0x6c] ss:$16 sps:$4 sm:$0xff]  }
  0x26   : > { %661 = vmatprep.subr.bf16.mxu0 %v2929_v20  ;;  %702 = vmatprep.subr.bf16.mxu1 %v2941_v22  ;;  %4270 = vst [vmem:[#allocation5_spill] sm:$0xff] %v3102_v50  ;;  %4271 = vst [vmem:[#allocation6_spill] sm:$0xff] %v3107_v51  ;;  %v3118_v53 = vld [vmem:[%s4123_s6 + $0x60] ss:$16 sps:$4 sm:$0xff]   ;;  %v3124_v54 = vld [vmem:[%s4123_s6 + $0x84] ss:$16 sps:$4 sm:$0xff]  }
  0x27   : > { %4272 = vst [vmem:[#allocation7_spill] sm:$0xff] %v3112_v52  ;;  %4273 = vst [vmem:[#allocation8_spill] sm:$0xff] %v3118_v53  ;;  %v3130_v55 = vld [vmem:[%s4123_s6 + $0x68] ss:$16 sps:$4 sm:$0xff]   ;;  %v3136_v56 = vld [vmem:[%s4123_s6 + $0x8c] ss:$16 sps:$4 sm:$0xff]  }
  0x28   : > { %4274 = vst [vmem:[#allocation9_spill] sm:$0xff] %v3124_v54  ;;  %4275 = vst [vmem:[#allocation10_spill] sm:$0xff] %v3130_v55  ;;  %v3142_v57 = vld [vmem:[%s4123_s6 + $0x80] ss:$16 sps:$4 sm:$0xff]   ;;  %v3148_v58 = vld [vmem:[%s4123_s6 + $0xa4] ss:$16 sps:$4 sm:$0xff]  }
  0x29   : > { %662 = vmatpush1.bf16.msra.mxu0 %v2947_v23  ;;  %703 = vmatpush1.bf16.msra.mxu1 %v2959_v25  ;;  %4276 = vst [vmem:[#allocation11_spill] sm:$0xff] %v3136_v56  ;;  %4277 = vst [vmem:[#allocation12_spill] sm:$0xff] %v3142_v57  ;;  %v3154_v59 = vld [vmem:[%s4123_s6 + $0x88] ss:$16 sps:$4 sm:$0xff]   ;;  %v3160_v60 = vld [vmem:[%s4123_s6 + $0xac] ss:$16 sps:$4 sm:$0xff]  }
  0x2a   : > { %663 = vmatprep.subr.bf16.mxu0 %v2953_v24  ;;  %704 = vmatprep.subr.bf16.mxu1 %v2965_v26  ;;  %4278 = vst [vmem:[#allocation13_spill] sm:$0xff] %v3148_v58  ;;  %4279 = vst [vmem:[#allocation14_spill] sm:$0xff] %v3154_v59  ;;  %v3166_v61 = vld [vmem:[%s4123_s6 + $0xa0] ss:$16 sps:$4 sm:$0xff]   ;;  %v3172_v62 = vld [vmem:[%s4123_s6 + $0xc4] ss:$16 sps:$4 sm:$0xff]  }
  0x2b   : > { %4280 = vst [vmem:[#allocation15_spill] sm:$0xff] %v3160_v60  ;;  %4281 = vst [vmem:[#allocation16_spill] sm:$0xff] %v3166_v61  ;;  %v3180_v63 = vld [vmem:[%s4123_s6 + $0xa8] ss:$16 sps:$4 sm:$0xff]   ;;  %v3186_v0 = vld [vmem:[%s4123_s6 + $0xcc] ss:$16 sps:$4 sm:$0xff]  }
  0x2c   : > { %4282 = vst [vmem:[#allocation17_spill] sm:$0xff] %v3172_v62  ;;  %4283 = vst [vmem:[#allocation18_spill] sm:$0xff] %v3180_v63  ;;  %v3192_v1 = vld [vmem:[%s4123_s6 + $0xc0] ss:$16 sps:$4 sm:$0xff]   ;;  %v3199_v2 = vld [vmem:[%s4123_s6 + $0xc8] ss:$16 sps:$4 sm:$0xff]  }
  0x2d   : > { %664 = vmatpush1.bf16.msra.mxu0 %v2971_v27  ;;  %705 = vmatpush1.bf16.msra.mxu1 %v2983_v29  ;;  %4284 = vst [vmem:[#allocation19_spill] sm:$0xff] %v3186_v0  ;;  %4285 = vst [vmem:[#allocation20_spill] sm:$0xff] %v3192_v1  ;;  %v3207_v3 = vld [vmem:[%s4123_s6 + $0xe4] ss:$16 sps:$4 sm:$0xff]   ;;  %v3212_v36 = vld [vmem:[%s4123_s6 + $0xec] ss:$16 sps:$4 sm:$0xff]  }
  0x2e   : > { %665 = vmatprep.subr.bf16.mxu0 %v2977_v28  ;;  %706 = vmatprep.subr.bf16.mxu1 %v2989_v30  ;;  %4286 = vst [vmem:[#allocation21_spill] sm:$0xff] %v3199_v2  ;;  %4287 = vst [vmem:[#allocation22_spill] sm:$0xff] %v3207_v3  ;;  %p2376_p5 = scmp.eq.s32.totalorder %s2808_s10, 1  ;;  %s2710_s24 = scalar_lea.vmem %s2163_s23, 256 }
  0x2f   : > { %4288 = vst [vmem:[#allocation23_spill] sm:$0xff] %v3212_v36  ;;  %p2711_p6 = scmp.ne.s32.totalorder %s2163_s23, %s2710_s24  ;;  %p2718_p10 = scmp.lt.s32.totalorder %s2710_s24, %s2710_s24 }
  0x31   : > { %666 = vmatpush1.bf16.msra.mxu0 %v2995_v31  ;;  %707 = vmatpush1.bf16.msra.mxu1 %v3007_v33  ;;  %p2712_p7 = pnand %p2711_p6, %p2376_p5  ;;  %p2719_p11 = por %p2718_p10, %p2717_p9 }
  0x32   : > { %667 = vmatprep.subr.bf16.mxu0 %v3001_v32  ;;  %708 = vmatprep.subr.bf16.mxu1 %v3018_v35 }
  0x33   : > { %p2713_p8 = pneg %p2712_p7 }
  0x35   : > { %668 = vmatpush1.bf16.msra.mxu0 %v3013_v34  ;;  %709 = vmatpush1.bf16.msra.mxu1 %v3034_v38  ;;  %p2720_p12 = pnand %p2719_p11, %p2713_p8 }
  0x36   : > { %914 = vmatprep.subr.bf16.mxu0 %v3028_v37  ;;  %955 = vmatprep.subr.bf16.mxu1 %v3040_v40 }
  0x38   : > { %686 = vmatmul.mubr.bf16.vlgmr.msra.gmra.mrb[0].mxu0 %v492_v39  ;;  %727 = vmatmul.mubr.bf16.vlgmr.msra.gmra.mrb[0].mxu1 %v492_v39  ;;  %v3217_v39 = vld [vmem:[%s4123_s6 + $0xe0] ss:$16 sps:$4 sm:$0xff]  }
  0x39   : > { %915 = vmatpush1.bf16.msra.mxu0 %v3046_v41  ;;  %946 = vmatprep.mubr.bf16.mxu0 %v4127_v6  ;;  %4289 = vst [vmem:[#allocation24_spill] sm:$0xff] %v3217_v39 }
  0x3a   : > { %916 = vmatprep.subr.bf16.mxu0 %v3052_v42  ;;  %956 = vmatpush1.bf16.msra.mxu1 %v3058_v43 }
  0x3b   : > { %987 = vmatprep.mubr.bf16.mxu1 %v4127_v6  ;;  %957 = vmatprep.subr.bf16.mxu1 %v3064_v44  ;;  %v3222_v6 = vld [vmem:[%s4123_s6 + $0xe8] ss:$16 sps:$4 sm:$0xff]  }
  0x3c   : > { %4290 = vst [vmem:[#allocation25_spill] sm:$0xff] %v3222_v6 }
  0x3d   : > { %917 = vmatpush1.bf16.msra.mxu0 %v3070_v45 }
  0x3e   : > { %918 = vmatprep.subr.bf16.mxu0 %v3077_v46  ;;  %958 = vmatpush1.bf16.msra.mxu1 %v3083_v47 }
  0x3f   : > { %959 = vmatprep.subr.bf16.mxu1 %v3090_v48 }
  0x41   : > { %919 = vmatpush1.bf16.msra.mxu0 %v3096_v49 }
  0x42   : > { %920 = vmatprep.subr.bf16.mxu0 %v3107_v51  ;;  %960 = vmatpush1.bf16.msra.mxu1 %v3102_v50 }
  0x43   : > { %961 = vmatprep.subr.bf16.mxu1 %v3112_v52 }
  0x45   : > { %921 = vmatpush1.bf16.msra.mxu0 %v3118_v53 }
  0x46   : > { %922 = vmatprep.subr.bf16.mxu0 %v3124_v54  ;;  %962 = vmatpush1.bf16.msra.mxu1 %v3130_v55 }
  0x47   : > { %963 = vmatprep.subr.bf16.mxu1 %v3136_v56 }
  0x49   : > { %923 = vmatpush1.bf16.msra.mxu0 %v3142_v57 }
  0x4a   : > { %924 = vmatprep.subr.bf16.mxu0 %v3148_v58  ;;  %964 = vmatpush1.bf16.msra.mxu1 %v3154_v59 }
  0x4b   : > { %965 = vmatprep.subr.bf16.mxu1 %v3160_v60 }
  0x4d   : > { %925 = vmatpush1.bf16.msra.mxu0 %v3166_v61 }
  0x4e   : > { %926 = vmatprep.subr.bf16.mxu0 %v3172_v62  ;;  %966 = vmatpush1.bf16.msra.mxu1 %v3180_v63  ;;  %v431_v63 = vld [vmem:[%s4120_s3] sm:$0xf] }
  0x4f   : > { %967 = vmatprep.subr.bf16.mxu1 %v3186_v0 }
  0x51   : > { %927 = vmatpush1.bf16.msra.mxu0 %v3192_v1  ;;  %v3236_v1 = vld [vmem:[%s4122_s5 + $0xc] ss:$16 sps:$4 sm:$0xff]  }
  0x52   : > { %968 = vmatpush1.bf16.msra.mxu1 %v3199_v2  ;;  %928 = vmatprep.subr.bf16.mxu0 %v3207_v3  ;;  %v3231_v2 = vld [vmem:[%s4122_s5 + $0x4] ss:$16 sps:$4 sm:$0xff]   ;;  %4292 = vst [vmem:[#allocation27_spill] sm:$0xff] %v3236_v1  ;;  %v2215_v3 = vld [vmem:[%s4125_s8 + $0x8] sm:$0xff] }
  0x53   : > { %969 = vmatprep.subr.bf16.mxu1 %v3212_v36  ;;  %4291 = vst [vmem:[#allocation26_spill] sm:$0xff] %v3231_v2  ;;  %v481_v0 = vpack.c.bf16 %v2215_v3, %v2215_v3  ;;  %v3258_v3 = vld [vmem:[%s4122_s5 + $0x24] ss:$16 sps:$4 sm:$0xff]   ;;  %v3263_v36 = vld [vmem:[%s4122_s5 + $0x2c] ss:$16 sps:$4 sm:$0xff]  }
  0x54   : > { %4295 = vst [vmem:[#allocation30_spill] sm:$0xff] %v3258_v3  ;;  %4296 = vst [vmem:[#allocation31_spill] sm:$0xff] %v3263_v36 }
  0x55   : > { %929 = vmatpush1.bf16.msra.mxu0 %v3217_v39  ;;  %v3244_v39 = vld [vmem:[%s4122_s5] ss:$16 sps:$4 sm:$0xff]  }
  0x56   : > { %970 = vmatpush1.bf16.msra.mxu1 %v3222_v6  ;;  %4293 = vst [vmem:[#allocation28_spill] sm:$0xff] %v3244_v39  ;;  %v3249_v6 = vld [vmem:[%s4122_s5 + $0x8] ss:$16 sps:$4 sm:$0xff]   ;;  %1157 = vmatprep.subr.bf16.mxu0 %v3231_v2  ;;  %v3289_v2 = vld [vmem:[%s4122_s5 + $0x4c] ss:$16 sps:$4 sm:$0xff]  }
  0x57   : > { %4294 = vst [vmem:[#allocation29_spill] sm:$0xff] %v3249_v6  ;;  %1198 = vmatprep.subr.bf16.mxu1 %v3236_v1  ;;  %v3268_v1 = vld [vmem:[%s4122_s5 + $0x20] ss:$16 sps:$4 sm:$0xff]   ;;  %4301 = vst [vmem:[#allocation35_spill] sm:$0xff] %v3289_v2 }
  0x58   : > { %947 = vmatmul.mubr.bf16.vlgmr.msra.gmra.mrb[4].mxu0 %v481_v0  ;;  %4297 = vst [vmem:[#allocation32_spill] sm:$0xff] %v3268_v1 }
  0x59   : > { %988 = vmatmul.mubr.bf16.vlgmr.msra.gmra.mrb[4].mxu1 %v481_v0  ;;  %1158 = vmatpush1.bf16.msra.mxu0 %v3244_v39  ;;  %v3273_v0 = vld [vmem:[%s4122_s5 + $0x28] ss:$16 sps:$4 sm:$0xff]   ;;  %v3284_v39 = vld [vmem:[%s4122_s5 + $0x44] ss:$16 sps:$4 sm:$0xff]  }
  0x5a   : > { %1199 = vmatpush1.bf16.msra.mxu1 %v3249_v6  ;;  %4298 = vst [vmem:[#allocation33_spill] sm:$0xff] %v3273_v0  ;;  %v4299_v6 = vmov 0   ;;  %1159 = vmatprep.subr.bf16.mxu0 %v3258_v3  ;;  %4300 = vst [vmem:[#allocation34_spill] sm:$0xff] %v3284_v39  ;;  %v3294_v3 = vld [vmem:[%s4122_s5 + $0x40] ss:$16 sps:$4 sm:$0xff]  }
  0x5b   : > { %1189 = vmatprep.mubr.bf16.mxu0 %v4299_v6  ;;  %1230 = vmatprep.mubr.bf16.mxu1 %v4299_v6  ;;  %4302 = vst [vmem:[#allocation36_spill] sm:$0xff] %v3294_v3 }
  0x5c   : > { %1200 = vmatprep.subr.bf16.mxu1 %v3263_v36  ;;  %v3313_v36 = vld [vmem:[%s4122_s5 + $0x6c] ss:$16 sps:$4 sm:$0xff]  }
  0x5d   : > { %1160 = vmatpush1.bf16.msra.mxu0 %v3268_v1  ;;  %v3299_v1 = vld [vmem:[%s4122_s5 + $0x48] ss:$16 sps:$4 sm:$0xff]   ;;  %4305 = vst [vmem:[#allocation39_spill] sm:$0xff] %v3313_v36 }
  0x5e   : > { %1201 = vmatpush1.bf16.msra.mxu1 %v3273_v0  ;;  %4303 = vst [vmem:[#allocation37_spill] sm:$0xff] %v3299_v1  ;;  %1161 = vmatprep.subr.bf16.mxu0 %v3284_v39  ;;  %v3308_v0 = vld [vmem:[%s4122_s5 + $0x64] ss:$16 sps:$4 sm:$0xff]   ;;  %v3318_v39 = vld [vmem:[%s4122_s5 + $0x60] ss:$16 sps:$4 sm:$0xff]  }
  0x5f   : > { %1202 = vmatprep.subr.bf16.mxu1 %v3289_v2  ;;  %4304 = vst [vmem:[#allocation38_spill] sm:$0xff] %v3308_v0  ;;  %4306 = vst [vmem:[#allocation40_spill] sm:$0xff] %v3318_v39  ;;  %v3337_v2 = vld [vmem:[%s4122_s5 + $0x8c] ss:$16 sps:$4 sm:$0xff]  }
  0x60   : > { %4309 = vst [vmem:[#allocation43_spill] sm:$0xff] %v3337_v2 }
  0x61   : > { %1162 = vmatpush1.bf16.msra.mxu0 %v3294_v3  ;;  %v3323_v3 = vld [vmem:[%s4122_s5 + $0x68] ss:$16 sps:$4 sm:$0xff]  }
  0x62   : > { %1203 = vmatpush1.bf16.msra.mxu1 %v3299_v1  ;;  %4307 = vst [vmem:[#allocation41_spill] sm:$0xff] %v3323_v3  ;;  %1163 = vmatprep.subr.bf16.mxu0 %v3308_v0  ;;  %v3332_v1 = vld [vmem:[%s4122_s5 + $0x84] ss:$16 sps:$4 sm:$0xff]   ;;  %v3342_v0 = vld [vmem:[%s4122_s5 + $0x80] ss:$16 sps:$4 sm:$0xff]  }
  0x63   : > { %1204 = vmatprep.subr.bf16.mxu1 %v3313_v36  ;;  %4308 = vst [vmem:[#allocation42_spill] sm:$0xff] %v3332_v1  ;;  %4310 = vst [vmem:[#allocation44_spill] sm:$0xff] %v3342_v0  ;;  %v3359_v36 = vld [vmem:[%s4122_s5 + $0xac] ss:$16 sps:$4 sm:$0xff]  }
  0x64   : > { %4313 = vst [vmem:[#allocation47_spill] sm:$0xff] %v3359_v36 }
  0x65   : > { %1164 = vmatpush1.bf16.msra.mxu0 %v3318_v39  ;;  %v3347_v39 = vld [vmem:[%s4122_s5 + $0x88] ss:$16 sps:$4 sm:$0xff]  }
  0x66   : > { %1205 = vmatpush1.bf16.msra.mxu1 %v3323_v3  ;;  %4311 = vst [vmem:[#allocation45_spill] sm:$0xff] %v3347_v39  ;;  %1165 = vmatprep.subr.bf16.mxu0 %v3332_v1  ;;  %v3354_v3 = vld [vmem:[%s4122_s5 + $0xa4] ss:$16 sps:$4 sm:$0xff]   ;;  %v3366_v1 = vld [vmem:[%s4122_s5 + $0xa0] ss:$16 sps:$4 sm:$0xff]  }
  0x67   : > { %1206 = vmatprep.subr.bf16.mxu1 %v3337_v2  ;;  %4312 = vst [vmem:[#allocation46_spill] sm:$0xff] %v3354_v3  ;;  %4314 = vst [vmem:[#allocation48_spill] sm:$0xff] %v3366_v1  ;;  %v3371_v2 = vld [vmem:[%s4122_s5 + $0xa8] ss:$16 sps:$4 sm:$0xff]  }
  0x68   : > { %4315 = vst [vmem:[#allocation49_spill] sm:$0xff] %v3371_v2 }
  0x69   : > { %1166 = vmatpush1.bf16.msra.mxu0 %v3342_v0  ;;  %v3378_v0 = vld [vmem:[%s4122_s5 + $0xc4] ss:$16 sps:$4 sm:$0xff]  }
  0x6a   : > { %1207 = vmatpush1.bf16.msra.mxu1 %v3347_v39  ;;  %1167 = vmatprep.subr.bf16.mxu0 %v3354_v3  ;;  %4316 = vst [vmem:[#allocation50_spill] sm:$0xff] %v3378_v0  ;;  %v3383_v39 = vld [vmem:[%s4122_s5 + $0xcc] ss:$16 sps:$4 sm:$0xff]   ;;  %v3390_v3 = vld [vmem:[%s4122_s5 + $0xc0] ss:$16 sps:$4 sm:$0xff]  }
  0x6b   : > { %1208 = vmatprep.subr.bf16.mxu1 %v3359_v36  ;;  %4317 = vst [vmem:[#allocation51_spill] sm:$0xff] %v3383_v39  ;;  %4318 = vst [vmem:[#allocation52_spill] sm:$0xff] %v3390_v3  ;;  %v3395_v36 = vld [vmem:[%s4122_s5 + $0xc8] ss:$16 sps:$4 sm:$0xff]  }
  0x6c   : > { %4319 = vst [vmem:[#allocation53_spill] sm:$0xff] %v3395_v36 }
  0x6d   : > { %1168 = vmatpush1.bf16.msra.mxu0 %v3366_v1  ;;  %v3402_v1 = vld [vmem:[%s4122_s5 + $0xe4] ss:$16 sps:$4 sm:$0xff]  }
  0x6e   : > { %1209 = vmatpush1.bf16.msra.mxu1 %v3371_v2  ;;  %1169 = vmatprep.subr.bf16.mxu0 %v3378_v0  ;;  %4320 = vst [vmem:[#allocation54_spill] sm:$0xff] %v3402_v1  ;;  %v3407_v2 = vld [vmem:[%s4122_s5 + $0xec] ss:$16 sps:$4 sm:$0xff]   ;;  %v3414_v0 = vld [vmem:[%s4122_s5 + $0xe0] ss:$16 sps:$4 sm:$0xff]  }
  0x6f   : > { %1210 = vmatprep.subr.bf16.mxu1 %v3383_v39  ;;  %4321 = vst [vmem:[#allocation55_spill] sm:$0xff] %v3407_v2  ;;  %4322 = vst [vmem:[#allocation56_spill] sm:$0xff] %v3414_v0  ;;  %v3419_v39 = vld [vmem:[%s4122_s5 + $0xe8] ss:$16 sps:$4 sm:$0xff]  }
  0x70   : > { %4323 = vst [vmem:[#allocation57_spill] sm:$0xff] %v3419_v39 }
  0x71   : > { %1170 = vmatpush1.bf16.msra.mxu0 %v3390_v3 }
  0x72   : > { %1211 = vmatpush1.bf16.msra.mxu1 %v3395_v36  ;;  %1171 = vmatprep.subr.bf16.mxu0 %v3402_v1  ;;  %v433_v36 = vlaneseq  ;;  %v482_v1 = vld [vmem:[%s2816_s15] sm:$0xff] }
  0x73   : > { %1212 = vmatprep.subr.bf16.mxu1 %v3407_v2  ;;  %v485_v61 = vunpack.c.h.bf16 %v482_v1 }
  0x74   : > { %v3427_v3 = vshrl.u32 %v433_v36, 7 }
  0x75   : > { %1172 = vmatpush1.bf16.msra.mxu0 %v3414_v0 }
  0x76   : > { %1213 = vmatpush1.bf16.msra.mxu1 %v3419_v39  ;;  %1270 = vmatprep.subr.bf16.mxu0 %v2840_v4  ;;  %4324 = vst [vmem:[#allocation58_spill] sm:$0xff] %v3427_v3  ;;  %v4223_v62 = vsub.s32 0, %v3427_v3  ;;  %v4232_v2 = vsub.s32 1, %v3427_v3  ;;  %v4235_v0 = vsub.s32 3, %v3427_v3  ;;  %v484_v4 = vunpack.c.l.bf16 %v482_v1 }
  0x77   : > { %1311 = vmatprep.subr.bf16.mxu1 %v2853_v7  ;;  %v483_v7 = vld [vmem:[%s2816_s15 + $0x8] sm:$0xff]  ;;  %v4244_v56 = vsub.s32 2, %v3427_v3 }
  0x78   : > { %v3438_v39 = vrot.slane %v431_v63, %v4223_v62  ;;  %v3443_v36 = vrot.slane %v431_v63, %v4232_v2  ;;  %v3447_v60 = vrot.slane %v431_v63, %v4235_v0  ;;  %v487_v58 = vunpack.c.h.bf16 %v483_v7 }
  0x79   : > { %v3455_v1 = vrot.slane %v431_v63, %v4244_v56  ;;  %v486_v0 = vunpack.c.l.bf16 %v483_v7  ;;  %v476_v63 = vld [vmem:[#allocation2] sm:$0xff] }
  0x7a   : > { %4325 = vst [vmem:[#allocation59_spill] sm:$0xff] %v3438_v39  ;;  %4326 = vst [vmem:[#allocation60_spill] sm:$0xff] %v3443_v36  ;;  %v488_v59 = vadd.f32 %v484_v4, %v3438_v39  ;;  %v489_v57 = vadd.f32 %v485_v61, %v3443_v36  ;;  %v491_v54 = vadd.f32 %v487_v58, %v3447_v60 }
  0x7b   : > { %4327 = vst [vmem:[#allocation61_spill] sm:$0xff] %v3447_v60  ;;  %v490_v58 = vadd.f32 %v486_v0, %v3455_v1 }
 0x10b   : > { %v687_v62 = vpop.f32.mrb[0].mxu0  ;;  %v728_v2 = vpop.f32.mrb[0].mxu1 }
 0x10c   : > { %v735_v55 = vadd.f32 %v687_v62, %v488_v59  ;;  %v689_v53 = vpop.f32.mrb[1].mxu0  ;;  %v730_v50 = vpop.f32.mrb[1].mxu1  ;;  %v737_v59 = vadd.f32 %v728_v2, %v490_v58  ;;  %v4349_v58 = vld [vmem:[#allocation26_spill] sm:$0xff] }
 0x10d   : > { %v736_v52 = vadd.f32 %v689_v53, %v489_v57  ;;  %v691_v51 = vpop.f32.mrb[2].mxu0  ;;  %v738_v61 = vadd.f32 %v730_v50, %v491_v54  ;;  %v732_v36 = vpop.f32.mrb[2].mxu1 }
 0x10e   : > { %2534 = vtanh.f32 %v735_v55  ;;  %v692_v4 = vpop.f32.mrb[3].mxu0  ;;  %v733_v39 = vpop.f32.mrb[3].mxu1  ;;  %v4347_v36 = vld [vmem:[#allocation24_spill] sm:$0xff] }
 0x10f   : > { %2536 = vtanh.f32 %v736_v52 }
 0x110   : > { %2538 = vtanh.f32 %v738_v61  ;;  %v4348_v61 = vld [vmem:[#allocation25_spill] sm:$0xff] }
 0x111   : > { %2540 = vtanh.f32 %v737_v59  ;;  %v4350_v59 = vld [vmem:[#allocation27_spill] sm:$0xff] }
 0x118   : > { %v2535_v62 = vpop.eup %2534 }
 0x119   : > { %v2537_v53 = vpop.eup %2536  ;;  %v743_v57 = vadd.f32 1.0, %v2535_v62  ;;  %v453_v62 = vld [vmem:[%s4124_s7] sm:$0xf] }
 0x11a   : > { %v745_v51 = vadd.f32 1.0, %v2537_v53  ;;  %v2539_v55 = vpop.eup %2538  ;;  %v4351_v53 = vld [vmem:[#allocation58_spill] sm:$0xff] }
 0x11b   : > { %v744_v60 = vmul.f32 0.5, %v743_v57  ;;  %v2541_v50 = vpop.eup %2540  ;;  %v4352_v57 = vsub.s32 0, %v4351_v53 }
 0x11c   : > { %v746_v56 = vmul.f32 0.5, %v745_v51  ;;  %v747_v52 = vadd.f32 1.0, %v2541_v50 }
 0x11d   : > { %v750_v7 = vmul.f32 %v2539_v55, %v744_v60  ;;  %v4345_v60 = vld [vmem:[#allocation22_spill] sm:$0xff]  ;;  %v3534_v51 = vrot.slane %v453_v62, %v4352_v57  ;;  %v4354_v55 = vsub.s32 1, %v4351_v53 }
 0x11e   : > { %v749_v3 = vmul.f32 %v746_v56, %v476_v63  ;;  %v748_v54 = vmul.f32 0.5, %v747_v52  ;;  %v4344_v56 = vld [vmem:[#allocation21_spill] sm:$0xff] }
 0x11f   : > { %v3538_v63 = vrot.slane %v453_v62, %v4354_v55 }
 0x120   : > { %v3458_v4 = vadd.f32 %v750_v7, %v749_v3  ;;  %v4346_v3 = vld [vmem:[#allocation23_spill] sm:$0xff]  ;;  %v4356_v7 = vsub.s32 3, %v4351_v53 }
 0x122   : > { %2542 = vtanh.f32 %v3458_v4  ;;  %v3542_v50 = vrot.slane %v453_v62, %v4356_v7  ;;  %v4358_v7 = vsub.s32 2, %v4351_v53 }
 0x12c   : > { %v2543_v39 = vpop.eup %2542 }
 0x12d   : > { %v753_v2 = vmul.f32 %v2543_v39, %v748_v54 }
 0x12f   : > { %v996_v0 = vpack.c.bf16 %v753_v2, %v753_v2 }
 0x131   : > { %1190 = vmatmul.mubr.bf16.vlgmr.msra.gmra.mrb[4].mxu0 %v996_v0  ;;  %1231 = vmatmul.mubr.bf16.vlgmr.msra.gmra.mrb[4].mxu1 %v996_v0 }
 0x132   : > { %1271 = vmatpush1.bf16.msra.mxu0 %v2845_v5  ;;  %1312 = vmatpush1.bf16.msra.mxu1 %v2858_v8  ;;  %v4328_v5 = vld [vmem:[#allocation5_spill] sm:$0xff]  ;;  %v4329_v8 = vld [vmem:[#allocation6_spill] sm:$0xff] }
 0x133   : > { %1272 = vmatprep.subr.bf16.mxu0 %v2864_v9  ;;  %1313 = vmatprep.subr.bf16.mxu1 %v2875_v11  ;;  %v4330_v9 = vld [vmem:[#allocation7_spill] sm:$0xff]  ;;  %v4332_v11 = vld [vmem:[#allocation10_spill] sm:$0xff]  ;;  %4353 = vst [vmem:[#allocation5_spill] sm:$0xff] %v3534_v51  ;;  %4355 = vst [vmem:[#allocation6_spill] sm:$0xff] %v3538_v63 }
 0x134   : > { %1302 = vmatprep.mubr.bf16.mxu0 %v4299_v6  ;;  %1343 = vmatprep.mubr.bf16.mxu1 %v4299_v6  ;;  %4357 = vst [vmem:[#allocation7_spill] sm:$0xff] %v3542_v50 }
 0x136   : > { %1273 = vmatpush1.bf16.msra.mxu0 %v2869_v10  ;;  %1314 = vmatpush1.bf16.msra.mxu1 %v2882_v12  ;;  %v4331_v10 = vld [vmem:[#allocation8_spill] sm:$0xff]  ;;  %v4333_v12 = vld [vmem:[#allocation9_spill] sm:$0xff] }
 0x137   : > { %1274 = vmatprep.subr.bf16.mxu0 %v2888_v13  ;;  %1315 = vmatprep.subr.bf16.mxu1 %v2899_v15  ;;  %v4334_v13 = vld [vmem:[#allocation11_spill] sm:$0xff]  ;;  %v4336_v15 = vld [vmem:[#allocation14_spill] sm:$0xff] }
 0x13a   : > { %1275 = vmatpush1.bf16.msra.mxu0 %v2894_v14  ;;  %1316 = vmatpush1.bf16.msra.mxu1 %v2911_v17  ;;  %v4335_v14 = vld [vmem:[#allocation12_spill] sm:$0xff]  ;;  %v4338_v17 = vld [vmem:[#allocation15_spill] sm:$0xff] }
 0x13b   : > { %1276 = vmatprep.subr.bf16.mxu0 %v2905_v16  ;;  %1317 = vmatprep.subr.bf16.mxu1 %v2917_v18  ;;  %v4337_v16 = vld [vmem:[#allocation13_spill] sm:$0xff]  ;;  %v4339_v18 = vld [vmem:[#allocation16_spill] sm:$0xff] }
 0x13e   : > { %1277 = vmatpush1.bf16.msra.mxu0 %v2923_v19  ;;  %1318 = vmatpush1.bf16.msra.mxu1 %v2935_v21  ;;  %v4340_v19 = vld [vmem:[#allocation18_spill] sm:$0xff]  ;;  %v4342_v21 = vld [vmem:[#allocation19_spill] sm:$0xff] }
 0x13f   : > { %1278 = vmatprep.subr.bf16.mxu0 %v2929_v20  ;;  %1319 = vmatprep.subr.bf16.mxu1 %v2941_v22  ;;  %v4341_v20 = vld [vmem:[#allocation17_spill] sm:$0xff]  ;;  %v4343_v22 = vld [vmem:[#allocation20_spill] sm:$0xff] }
 0x142   : > { %1279 = vmatpush1.bf16.msra.mxu0 %v2947_v23  ;;  %1320 = vmatpush1.bf16.msra.mxu1 %v2959_v25 }
 0x143   : > { %1280 = vmatprep.subr.bf16.mxu0 %v2953_v24  ;;  %1321 = vmatprep.subr.bf16.mxu1 %v2965_v26 }
 0x146   : > { %1281 = vmatpush1.bf16.msra.mxu0 %v2971_v27  ;;  %1322 = vmatpush1.bf16.msra.mxu1 %v2983_v29 }
 0x147   : > { %1282 = vmatprep.subr.bf16.mxu0 %v2977_v28  ;;  %1323 = vmatprep.subr.bf16.mxu1 %v2989_v30 }
 0x14a   : > { %1283 = vmatpush1.bf16.msra.mxu0 %v2995_v31  ;;  %1324 = vmatpush1.bf16.msra.mxu1 %v3007_v33 }
 0x14b   : > { %1284 = vmatprep.subr.bf16.mxu0 %v3001_v32  ;;  %1325 = vmatprep.subr.bf16.mxu1 %v3018_v35 }
 0x14e   : > { %1285 = vmatpush1.bf16.msra.mxu0 %v3013_v34  ;;  %1326 = vmatpush1.bf16.msra.mxu1 %v3034_v38 }
 0x14f   : > { %1371 = vmatprep.subr.bf16.mxu0 %v3028_v37  ;;  %1412 = vmatprep.subr.bf16.mxu1 %v3040_v40 }
 0x151   : > { %1303 = vmatmul.mubr.bf16.vlgmr.msra.gmra.mrb[8].mxu0 %v996_v0  ;;  %1344 = vmatmul.mubr.bf16.vlgmr.msra.gmra.mrb[8].mxu1 %v996_v0 }
 0x152   : > { %1372 = vmatpush1.bf16.msra.mxu0 %v3046_v41  ;;  %1413 = vmatpush1.bf16.msra.mxu1 %v3058_v43 }
 0x153   : > { %1373 = vmatprep.subr.bf16.mxu0 %v3052_v42  ;;  %1414 = vmatprep.subr.bf16.mxu1 %v3064_v44 }
 0x154   : > { %1403 = vmatprep.mubr.bf16.mxu0 %v4299_v6  ;;  %1444 = vmatprep.mubr.bf16.mxu1 %v4299_v6 }
 0x156   : > { %1374 = vmatpush1.bf16.msra.mxu0 %v3070_v45  ;;  %1415 = vmatpush1.bf16.msra.mxu1 %v3083_v47 }
 0x157   : > { %1375 = vmatprep.subr.bf16.mxu0 %v3077_v46  ;;  %1416 = vmatprep.subr.bf16.mxu1 %v3090_v48 }
 0x15a   : > { %1376 = vmatpush1.bf16.msra.mxu0 %v3096_v49  ;;  %1417 = vmatpush1.bf16.msra.mxu1 %v4328_v5 }
 0x15b   : > { %1377 = vmatprep.subr.bf16.mxu0 %v4329_v8  ;;  %1418 = vmatprep.subr.bf16.mxu1 %v4330_v9 }
 0x15e   : > { %1378 = vmatpush1.bf16.msra.mxu0 %v4331_v10  ;;  %1419 = vmatpush1.bf16.msra.mxu1 %v4332_v11 }
 0x15f   : > { %1379 = vmatprep.subr.bf16.mxu0 %v4333_v12  ;;  %1420 = vmatprep.subr.bf16.mxu1 %v4334_v13 }
 0x162   : > { %1380 = vmatpush1.bf16.msra.mxu0 %v4335_v14  ;;  %1421 = vmatpush1.bf16.msra.mxu1 %v4336_v15 }
 0x163   : > { %1381 = vmatprep.subr.bf16.mxu0 %v4337_v16  ;;  %1422 = vmatprep.subr.bf16.mxu1 %v4338_v17 }
 0x166   : > { %1382 = vmatpush1.bf16.msra.mxu0 %v4339_v18  ;;  %1423 = vmatpush1.bf16.msra.mxu1 %v4340_v19 }
 0x167   : > { %1383 = vmatprep.subr.bf16.mxu0 %v4341_v20  ;;  %1424 = vmatprep.subr.bf16.mxu1 %v4342_v21 }
 0x16a   : > { %1384 = vmatpush1.bf16.msra.mxu0 %v4343_v22  ;;  %1425 = vmatpush1.bf16.msra.mxu1 %v4344_v56  ;;  %v4363_v56 = vld [vmem:[#allocation61_spill] sm:$0xff] }
 0x16b   : > { %1385 = vmatprep.subr.bf16.mxu0 %v4345_v60  ;;  %1426 = vmatprep.subr.bf16.mxu1 %v4346_v3  ;;  %v3549_v3 = vrot.slane %v453_v62, %v4358_v7  ;;  %v2313_v62 = vld [vmem:[%s2816_s15 + $0x18] sm:$0xff] }
 0x16d   : > { %4359 = vst [vmem:[#allocation8_spill] sm:$0xff] %v3549_v3 }
 0x16e   : > { %1386 = vmatpush1.bf16.msra.mxu0 %v4347_v36  ;;  %1427 = vmatpush1.bf16.msra.mxu1 %v4348_v61 }
 0x16f   : > { %1454 = vmatprep.subr.bf16.mxu0 %v4349_v58  ;;  %1495 = vmatprep.subr.bf16.mxu1 %v4350_v59 }
 0x204   : > { %v1191_v52 = vpop.f32.mrb[4].mxu0  ;;  %v1232_v54 = vpop.f32.mrb[4].mxu1 }
 0x205   : > { %v2324_v39 = vadd.f32 %v1191_v52, %v3534_v51  ;;  %v1193_v2 = vpop.f32.mrb[5].mxu0  ;;  %v1234_v0 = vpop.f32.mrb[5].mxu1  ;;  %v2326_v52 = vadd.f32 %v1232_v54, %v3549_v3  ;;  %v1265_v3 = vunpack.c.h.bf16 %v2313_v62 }
 0x206   : > { %v2325_v59 = vadd.f32 %v1193_v2, %v3538_v63  ;;  %v1195_v58 = vpop.f32.mrb[6].mxu0  ;;  %v1236_v61 = vpop.f32.mrb[6].mxu1  ;;  %v2327_v57 = vadd.f32 %v1234_v0, %v3542_v50  ;;  %v480_v0 = vld [vmem:[#allocation2 + $0x8] sm:$0xff]  ;;  %v4361_v63 = vld [vmem:[#allocation59_spill] sm:$0xff] }
 0x207   : > { %2544 = vtanh.f32 %v2324_v39  ;;  %v1196_v36 = vpop.f32.mrb[7].mxu0  ;;  %v1237_v55 = vpop.f32.mrb[7].mxu1  ;;  %v1269_v22 = vadd.f32 %v1265_v3, %v4363_v56 }
 0x208   : > { %2546 = vtanh.f32 %v2325_v59 }
 0x209   : > { %2548 = vtanh.f32 %v2327_v57  ;;  %v2312_v57 = vld [vmem:[%s2816_s15 + $0x10] sm:$0xff] }
 0x20a   : > { %2550 = vtanh.f32 %v2326_v52  ;;  %v1262_v53 = vunpack.c.l.bf16 %v2312_v57  ;;  %v1263_v54 = vunpack.c.h.bf16 %v2312_v57  ;;  %v4362_v52 = vld [vmem:[#allocation60_spill] sm:$0xff] }
 0x211   : > { %v2545_v51 = vpop.eup %2544 }
 0x212   : > { %v1247_v60 = vadd.f32 1.0, %v2545_v51  ;;  %v2547_v2 = vpop.eup %2546 }
 0x213   : > { %v1249_v61 = vadd.f32 1.0, %v2547_v2  ;;  %v2549_v39 = vpop.eup %2548  ;;  %v1267_v2 = vadd.f32 %v1263_v54, %v4362_v52 }
 0x214   : > { %v1248_v58 = vmul.f32 0.5, %v1247_v60  ;;  %v2551_v7 = vpop.eup %2550  ;;  %v1266_v60 = vadd.f32 %v1262_v53, %v4361_v63  ;;  %v1264_v53 = vunpack.c.l.bf16 %v2313_v62  ;;  %v4371_v62 = vld [vmem:[#allocation35_spill] sm:$0xff] }
 0x215   : > { %v1250_v36 = vmul.f32 0.5, %v1249_v61  ;;  %v1251_v51 = vadd.f32 1.0, %v2551_v7 }
 0x216   : > { %v1254_v55 = vmul.f32 %v2549_v39, %v1248_v58  ;;  %v1268_v3 = vadd.f32 %v1264_v53, %v3455_v1 }
 0x217   : > { %v1253_v59 = vmul.f32 %v1250_v36, %v480_v0  ;;  %v1252_v39 = vmul.f32 0.5, %v1251_v51  ;;  %v4364_v51 = vld [vmem:[#allocation28_spill] sm:$0xff] }
 0x219   : > { %v3552_v50 = vadd.f32 %v1254_v55, %v1253_v59 }
 0x21b   : > { %4360 = vst [vmem:[#allocation10_spill] sm:$0xff] %v3552_v50  ;;  %2552 = vtanh.f32 %v3552_v50 }
 0x224   : > { %v1304_v61 = vpop.f32.mrb[8].mxu0  ;;  %v1345_v58 = vpop.f32.mrb[8].mxu1 }
 0x225   : > { %v1352_v0 = vadd.f32 %v1304_v61, %v1266_v60  ;;  %v1306_v36 = vpop.f32.mrb[9].mxu0  ;;  %v1347_v55 = vpop.f32.mrb[9].mxu1  ;;  %v4365_v60 = vld [vmem:[#allocation29_spill] sm:$0xff] }
 0x226   : > { %v2553_v59 = vpop.eup %2552  ;;  %v1353_v50 = vadd.f32 %v1306_v36, %v1267_v2  ;;  %v1308_v21 = vpop.f32.mrb[10].mxu0  ;;  %v1355_v57 = vadd.f32 %v1347_v55, %v1269_v22  ;;  %v4366_v2 = vld [vmem:[#allocation30_spill] sm:$0xff]  ;;  %v4372_v55 = vld [vmem:[#allocation36_spill] sm:$0xff] }
 0x227   : > { %v1349_v20 = vpop.f32.mrb[10].mxu1  ;;  %2554 = vtanh.f32 %v1352_v0  ;;  %v1309_v19 = vpop.f32.mrb[11].mxu0  ;;  %v1257_v18 = vmul.f32 %v2553_v59, %v1252_v39  ;;  %v4368_v21 = vld [vmem:[#allocation32_spill] sm:$0xff]  ;;  %v4373_v59 = vld [vmem:[#allocation37_spill] sm:$0xff] }
 0x228   : > { %v1350_v7 = vpop.f32.mrb[11].mxu1  ;;  %2556 = vtanh.f32 %v1353_v50  ;;  %v4367_v20 = vld [vmem:[#allocation31_spill] sm:$0xff]  ;;  %v1354_v19 = vadd.f32 %v1345_v58, %v1268_v3  ;;  %v4370_v50 = vld [vmem:[#allocation34_spill] sm:$0xff] }
 0x229   : > { %v1258_v54 = vpack.c.bf16 %v1257_v18, %v1257_v18  ;;  %2558 = vtanh.f32 %v1355_v57  ;;  %v4369_v18 = vld [vmem:[#allocation33_spill] sm:$0xff]  ;;  %v4374_v58 = vld [vmem:[#allocation38_spill] sm:$0xff]  ;;  %v4375_v7 = vld [vmem:[#allocation39_spill] sm:$0xff] }
 0x22a   : > { %2560 = vtanh.f32 %v1354_v19  ;;  %v4379_v19 = vld [vmem:[#allocation43_spill] sm:$0xff] }
 0x22b   : > { %1404 = vmatmul.mubr.bf16.vlgmr.msra.gmra.mrb[12].mxu0 %v1258_v54  ;;  %1445 = vmatmul.mubr.bf16.vlgmr.msra.gmra.mrb[12].mxu1 %v1258_v54 }
 0x22c   : > { %1455 = vmatpush1.bf16.msra.mxu0 %v4364_v51  ;;  %1496 = vmatpush1.bf16.msra.mxu1 %v4365_v60 }
 0x22d   : > { %1456 = vmatprep.subr.bf16.mxu0 %v4366_v2  ;;  %1497 = vmatprep.subr.bf16.mxu1 %v4367_v20 }
 0x22e   : > { %1486 = vmatprep.mubr.bf16.mxu0 %v4299_v6  ;;  %1527 = vmatprep.mubr.bf16.mxu1 %v4299_v6 }
 0x230   : > { %1457 = vmatpush1.bf16.msra.mxu0 %v4368_v21  ;;  %1498 = vmatpush1.bf16.msra.mxu1 %v4369_v18 }
 0x231   : > { %v2555_v22 = vpop.eup %2554  ;;  %1458 = vmatprep.subr.bf16.mxu0 %v4370_v50  ;;  %1499 = vmatprep.subr.bf16.mxu1 %v4371_v62  ;;  %v4376_v50 = vld [vmem:[#allocation40_spill] sm:$0xff] }
 0x232   : > { %v1360_v61 = vadd.f32 1.0, %v2555_v22  ;;  %v2557_v39 = vpop.eup %2556  ;;  %v4377_v22 = vld [vmem:[#allocation41_spill] sm:$0xff] }
 0x233   : > { %v1362_v36 = vadd.f32 1.0, %v2557_v39  ;;  %v2559_v57 = vpop.eup %2558 }
 0x234   : > { %v1361_v0 = vmul.f32 0.5, %v1360_v61  ;;  %1459 = vmatpush1.bf16.msra.mxu0 %v4372_v55  ;;  %1500 = vmatpush1.bf16.msra.mxu1 %v4373_v59  ;;  %v4378_v61 = vld [vmem:[#allocation42_spill] sm:$0xff]  ;;  %v4381_v59 = vld [vmem:[#allocation44_spill] sm:$0xff] }
 0x235   : > { %1460 = vmatprep.subr.bf16.mxu0 %v4374_v58  ;;  %1501 = vmatprep.subr.bf16.mxu1 %v4375_v7  ;;  %v1363_v53 = vmul.f32 0.5, %v1362_v36  ;;  %v4382_v58 = vld [vmem:[#allocation45_spill] sm:$0xff]  ;;  %v4383_v36 = vld [vmem:[#allocation46_spill] sm:$0xff] }
 0x236   : > { %v1367_v54 = vmul.f32 %v2559_v57, %v1361_v0  ;;  %v4384_v0 = vld [vmem:[#allocation47_spill] sm:$0xff]  ;;  %v4385_v57 = vld [vmem:[#allocation48_spill] sm:$0xff] }
 0x237   : > { %v1366_v3 = vmul.f32 %v1363_v53, %v3458_v4  ;;  %v2561_v4 = vpop.eup %2560  ;;  %v4386_v53 = vld [vmem:[#allocation49_spill] sm:$0xff] }
 0x238   : > { %1461 = vmatpush1.bf16.msra.mxu0 %v4376_v50  ;;  %1502 = vmatpush1.bf16.msra.mxu1 %v4377_v22  ;;  %v4387_v22 = vld [vmem:[#allocation50_spill] sm:$0xff] }
 0x239   : > { %1462 = vmatprep.subr.bf16.mxu0 %v4378_v61  ;;  %1503 = vmatprep.subr.bf16.mxu1 %v4379_v19  ;;  %v3580_v39 = vadd.f32 %v1367_v54, %v1366_v3  ;;  %v1364_v61 = vadd.f32 1.0, %v2561_v4  ;;  %v4388_v54 = vld [vmem:[#allocation51_spill] sm:$0xff]  ;;  %v4389_v3 = vld [vmem:[#allocation52_spill] sm:$0xff]  ;;  %v4390_v19 = vld [vmem:[#allocation53_spill] sm:$0xff] }
 0x23b   : > { %4380 = vst [vmem:[#allocation9_spill] sm:$0xff] %v3580_v39  ;;  %2562 = vtanh.f32 %v3580_v39  ;;  %v4393_v39 = vld [vmem:[#allocation56_spill] sm:$0xff] }
 0x23c   : > { %1463 = vmatpush1.bf16.msra.mxu0 %v4381_v59  ;;  %1504 = vmatpush1.bf16.msra.mxu1 %v4382_v58  ;;  %v1365_v59 = vmul.f32 0.5, %v1364_v61  ;;  %v4391_v58 = vld [vmem:[#allocation54_spill] sm:$0xff] }
 0x23d   : > { %1464 = vmatprep.subr.bf16.mxu0 %v4383_v36  ;;  %1505 = vmatprep.subr.bf16.mxu1 %v4384_v0  ;;  %v4392_v36 = vld [vmem:[#allocation55_spill] sm:$0xff]  ;;  %v3606_v61 = vld [vmem:[%s4121_s4 + $0xc] ss:$16 sps:$4 sm:$0xff]  }
 0x23e   : > { %4395 = vst [vmem:[#allocation11_spill] sm:$0xff] %v3606_v61 }
 0x240   : > { %1465 = vmatpush1.bf16.msra.mxu0 %v4385_v57  ;;  %1506 = vmatpush1.bf16.msra.mxu1 %v4386_v53  ;;  %v4394_v57 = vld [vmem:[#allocation57_spill] sm:$0xff] }
 0x241   : > { %1466 = vmatprep.subr.bf16.mxu0 %v4387_v22  ;;  %1507 = vmatprep.subr.bf16.mxu1 %v4388_v54  ;;  %v3600_v54 = vld [vmem:[%s4121_s4 + $0x4] ss:$16 sps:$4 sm:$0xff]  }
 0x244   : > { %1467 = vmatpush1.bf16.msra.mxu0 %v4389_v3  ;;  %1508 = vmatpush1.bf16.msra.mxu1 %v4390_v19 }
 0x245   : > { %1468 = vmatprep.subr.bf16.mxu0 %v4391_v58  ;;  %1509 = vmatprep.subr.bf16.mxu1 %v4392_v36  ;;  %v2563_v0 = vpop.eup %2562 }
 0x246   : > { %v1370_v50 = vmul.f32 %v2563_v0, %v1365_v59  ;;  %v3618_v59 = vld [vmem:[%s4121_s4 + $0x8] ss:$16 sps:$4 sm:$0xff]   ;;  %v3624_v0 = vld [vmem:[%s4121_s4 + $0x24] ss:$16 sps:$4 sm:$0xff]  }
 0x247   : > { %4397 = vst [vmem:[#allocation14_spill] sm:$0xff] %v3618_v59  ;;  %4398 = vst [vmem:[#allocation13_spill] sm:$0xff] %v3624_v0 }
 0x248   : > { %1469 = vmatpush1.bf16.msra.mxu0 %v4393_v39  ;;  %1510 = vmatpush1.bf16.msra.mxu1 %v4394_v57  ;;  %v1453_v4 = vpack.c.bf16 %v1370_v50, %v1370_v50  ;;  %v3612_v50 = vld [vmem:[%s4121_s4] ss:$16 sps:$4 sm:$0xff]  }
 0x249   : > { %1567 = vmatprep.subr.bf16.mxu0 %v3600_v54  ;;  %1608 = vmatprep.subr.bf16.mxu1 %v3606_v61  ;;  %4396 = vst [vmem:[#allocation12_spill] sm:$0xff] %v3612_v50  ;;  %v3630_v61 = vld [vmem:[%s4121_s4 + $0x2c] ss:$16 sps:$4 sm:$0xff]  }
 0x24a   : > { %4399 = vst [vmem:[#allocation15_spill] sm:$0xff] %v3630_v61 }
 0x24b   : > { %1487 = vmatmul.mubr.bf16.vlgmr.msra.gmra.mrb[12].mxu0 %v1453_v4  ;;  %1528 = vmatmul.mubr.bf16.vlgmr.msra.gmra.mrb[12].mxu1 %v1453_v4 }
 0x24c   : > { %1568 = vmatpush1.bf16.msra.mxu0 %v3612_v50  ;;  %1609 = vmatpush1.bf16.msra.mxu1 %v3618_v59  ;;  %v3638_v59 = vld [vmem:[%s4121_s4 + $0x20] ss:$16 sps:$4 sm:$0xff]   ;;  %v3656_v50 = vld [vmem:[%s4121_s4 + $0x4c] ss:$16 sps:$4 sm:$0xff]  }
 0x24d   : > { %1569 = vmatprep.subr.bf16.mxu0 %v3624_v0  ;;  %1610 = vmatprep.subr.bf16.mxu1 %v3630_v61  ;;  %4400 = vst [vmem:[#allocation58_spill] sm:$0xff] %v3638_v59  ;;  %v3644_v0 = vld [vmem:[%s4121_s4 + $0x28] ss:$16 sps:$4 sm:$0xff]   ;;  %v3650_v61 = vld [vmem:[%s4121_s4 + $0x44] ss:$16 sps:$4 sm:$0xff]   ;;  %4403 = vst [vmem:[#allocation61_spill] sm:$0xff] %v3656_v50 }
 0x24e   : > { %1599 = vmatprep.mubr.bf16.mxu0 %v4299_v6  ;;  %1640 = vmatprep.mubr.bf16.mxu1 %v4299_v6  ;;  %4401 = vst [vmem:[#allocation59_spill] sm:$0xff] %v3644_v0  ;;  %4402 = vst [vmem:[#allocation60_spill] sm:$0xff] %v3650_v61 }
 0x250   : > { %1570 = vmatpush1.bf16.msra.mxu0 %v3638_v59  ;;  %1611 = vmatpush1.bf16.msra.mxu1 %v3644_v0  ;;  %v3662_v59 = vld [vmem:[%s4121_s4 + $0x40] ss:$16 sps:$4 sm:$0xff]   ;;  %v3668_v0 = vld [vmem:[%s4121_s4 + $0x48] ss:$16 sps:$4 sm:$0xff]  }
 0x251   : > { %1571 = vmatprep.subr.bf16.mxu0 %v3650_v61  ;;  %1612 = vmatprep.subr.bf16.mxu1 %v3656_v50  ;;  %4404 = vst [vmem:[#allocation28_spill] sm:$0xff] %v3662_v59  ;;  %4405 = vst [vmem:[#allocation29_spill] sm:$0xff] %v3668_v0  ;;  %v3674_v61 = vld [vmem:[%s4121_s4 + $0x64] ss:$16 sps:$4 sm:$0xff]   ;;  %v3680_v50 = vld [vmem:[%s4121_s4 + $0x6c] ss:$16 sps:$4 sm:$0xff]  }
 0x252   : > { %4406 = vst [vmem:[#allocation30_spill] sm:$0xff] %v3674_v61  ;;  %4407 = vst [vmem:[#allocation31_spill] sm:$0xff] %v3680_v50 }
 0x254   : > { %1572 = vmatpush1.bf16.msra.mxu0 %v3662_v59  ;;  %1613 = vmatpush1.bf16.msra.mxu1 %v3668_v0  ;;  %v3686_v59 = vld [vmem:[%s4121_s4 + $0x60] ss:$16 sps:$4 sm:$0xff]   ;;  %v3692_v0 = vld [vmem:[%s4121_s4 + $0x68] ss:$16 sps:$4 sm:$0xff]  }
 0x255   : > { %1573 = vmatprep.subr.bf16.mxu0 %v3674_v61  ;;  %1614 = vmatprep.subr.bf16.mxu1 %v3680_v50  ;;  %v3698_v61 = vld [vmem:[%s4121_s4 + $0x84] ss:$16 sps:$4 sm:$0xff]   ;;  %v3704_v50 = vld [vmem:[%s4121_s4 + $0x8c] ss:$16 sps:$4 sm:$0xff]  }
 0x258   : > { %1574 = vmatpush1.bf16.msra.mxu0 %v3686_v59  ;;  %1615 = vmatpush1.bf16.msra.mxu1 %v3692_v0 }
 0x259   : > { %1575 = vmatprep.subr.bf16.mxu0 %v3698_v61  ;;  %1616 = vmatprep.subr.bf16.mxu1 %v3704_v50 }
 0x25c   : > { %1576 = vmatpush1.bf16.msra.mxu0 %v2947_v23  ;;  %1617 = vmatpush1.bf16.msra.mxu1 %v2959_v25  ;;  %v4408_v23 = vld [vmem:[#allocation16_spill] sm:$0xff]  ;;  %v4410_v25 = vld [vmem:[#allocation17_spill] sm:$0xff] }
 0x25d   : > { %1577 = vmatprep.subr.bf16.mxu0 %v2953_v24  ;;  %1618 = vmatprep.subr.bf16.mxu1 %v2965_v26  ;;  %v4409_v24 = vld [vmem:[#allocation18_spill] sm:$0xff]  ;;  %v4411_v26 = vld [vmem:[#allocation19_spill] sm:$0xff] }
 0x260   : > { %1578 = vmatpush1.bf16.msra.mxu0 %v2971_v27  ;;  %1619 = vmatpush1.bf16.msra.mxu1 %v2983_v29  ;;  %v4412_v27 = vld [vmem:[#allocation20_spill] sm:$0xff]  ;;  %v4414_v29 = vld [vmem:[#allocation22_spill] sm:$0xff] }
 0x261   : > { %1579 = vmatprep.subr.bf16.mxu0 %v2977_v28  ;;  %1620 = vmatprep.subr.bf16.mxu1 %v2989_v30  ;;  %v4413_v28 = vld [vmem:[#allocation21_spill] sm:$0xff]  ;;  %v4415_v30 = vld [vmem:[#allocation23_spill] sm:$0xff] }
 0x264   : > { %1580 = vmatpush1.bf16.msra.mxu0 %v2995_v31  ;;  %1621 = vmatpush1.bf16.msra.mxu1 %v3007_v33  ;;  %v4416_v31 = vld [vmem:[#allocation24_spill] sm:$0xff]  ;;  %v4418_v33 = vld [vmem:[#allocation26_spill] sm:$0xff] }
 0x265   : > { %1581 = vmatprep.subr.bf16.mxu0 %v3001_v32  ;;  %1622 = vmatprep.subr.bf16.mxu1 %v3018_v35  ;;  %v4417_v32 = vld [vmem:[#allocation25_spill] sm:$0xff] }
 0x268   : > { %1582 = vmatpush1.bf16.msra.mxu0 %v3013_v34  ;;  %1623 = vmatpush1.bf16.msra.mxu1 %v3034_v38  ;;  %v4419_v34 = vld [vmem:[#allocation27_spill] sm:$0xff]  ;;  %v4420_v38 = vld [vmem:[#allocation5_spill] sm:$0xff] }
 0x269   : > { %1668 = vmatprep.subr.bf16.mxu0 %v3028_v37  ;;  %1709 = vmatprep.subr.bf16.mxu1 %v3040_v40 }
 0x26b   : > { %1600 = vmatmul.mubr.bf16.vlgmr.msra.gmra.mrb[16].mxu0 %v1453_v4  ;;  %1641 = vmatmul.mubr.bf16.vlgmr.msra.gmra.mrb[16].mxu1 %v1453_v4  ;;  %v4424_v4 = vld [vmem:[#allocation10_spill] sm:$0xff] }
 0x26c   : > { %1669 = vmatpush1.bf16.msra.mxu0 %v3046_v41  ;;  %1710 = vmatpush1.bf16.msra.mxu1 %v3058_v43  ;;  %v4421_v43 = vld [vmem:[#allocation6_spill] sm:$0xff] }
 0x26d   : > { %1670 = vmatprep.subr.bf16.mxu0 %v3052_v42  ;;  %1711 = vmatprep.subr.bf16.mxu1 %v3064_v44 }
 0x26e   : > { %1700 = vmatprep.mubr.bf16.mxu0 %v4299_v6  ;;  %1741 = vmatprep.mubr.bf16.mxu1 %v4299_v6 }
 0x270   : > { %1671 = vmatpush1.bf16.msra.mxu0 %v3070_v45  ;;  %1712 = vmatpush1.bf16.msra.mxu1 %v3083_v47  ;;  %v4422_v47 = vld [vmem:[#allocation7_spill] sm:$0xff] }
 0x271   : > { %1672 = vmatprep.subr.bf16.mxu0 %v3077_v46  ;;  %1713 = vmatprep.subr.bf16.mxu1 %v3090_v48 }
 0x274   : > { %1673 = vmatpush1.bf16.msra.mxu0 %v3096_v49  ;;  %1714 = vmatpush1.bf16.msra.mxu1 %v4328_v5 }
 0x275   : > { %1674 = vmatprep.subr.bf16.mxu0 %v4329_v8  ;;  %1715 = vmatprep.subr.bf16.mxu1 %v4330_v9  ;;  %v4423_v8 = vld [vmem:[#allocation8_spill] sm:$0xff] }
 0x278   : > { %1675 = vmatpush1.bf16.msra.mxu0 %v4331_v10  ;;  %1716 = vmatpush1.bf16.msra.mxu1 %v4332_v11 }
 0x279   : > { %1676 = vmatprep.subr.bf16.mxu0 %v4333_v12  ;;  %1717 = vmatprep.subr.bf16.mxu1 %v4334_v13 }
 0x27c   : > { %1677 = vmatpush1.bf16.msra.mxu0 %v4335_v14  ;;  %1718 = vmatpush1.bf16.msra.mxu1 %v4336_v15 }
 0x27d   : > { %1678 = vmatprep.subr.bf16.mxu0 %v4337_v16  ;;  %1719 = vmatprep.subr.bf16.mxu1 %v4338_v17 }
 0x280   : > { %1679 = vmatpush1.bf16.msra.mxu0 %v4408_v23  ;;  %1720 = vmatpush1.bf16.msra.mxu1 %v4409_v24 }
 0x281   : > { %1680 = vmatprep.subr.bf16.mxu0 %v4410_v25  ;;  %1721 = vmatprep.subr.bf16.mxu1 %v4411_v26  ;;  %v2314_v25 = vld [vmem:[%s2816_s15 + $0x20] sm:$0xff]  ;;  %v2315_v26 = vld [vmem:[%s2816_s15 + $0x28] sm:$0xff] }
 0x284   : > { %1681 = vmatpush1.bf16.msra.mxu0 %v4412_v27  ;;  %1722 = vmatpush1.bf16.msra.mxu1 %v4413_v28  ;;  %v1559_v27 = vunpack.c.l.bf16 %v2314_v25 }
 0x285   : > { %1682 = vmatprep.subr.bf16.mxu0 %v4414_v29  ;;  %1723 = vmatprep.subr.bf16.mxu1 %v4415_v30  ;;  %v1560_v29 = vunpack.c.h.bf16 %v2314_v25  ;;  %v1562_v30 = vunpack.c.h.bf16 %v2315_v26  ;;  %v4427_v25 = vld [vmem:[#allocation38_spill] sm:$0xff] }
 0x288   : > { %1683 = vmatpush1.bf16.msra.mxu0 %v4416_v31  ;;  %1724 = vmatpush1.bf16.msra.mxu1 %v4417_v32  ;;  %v1563_v32 = vadd.f32 %v1559_v27, %v4361_v63 }
 0x289   : > { %1751 = vmatprep.subr.bf16.mxu0 %v4418_v33  ;;  %1792 = vmatprep.subr.bf16.mxu1 %v4419_v34  ;;  %v1564_v33 = vadd.f32 %v1560_v29, %v4362_v52  ;;  %v1566_v34 = vadd.f32 %v1562_v30, %v4363_v56  ;;  %v4431_v29 = vld [vmem:[#allocation42_spill] sm:$0xff]  ;;  %v4432_v30 = vld [vmem:[#allocation43_spill] sm:$0xff] }
 0x31e   : > { %v1488_v35 = vpop.f32.mrb[12].mxu0  ;;  %v1529_v37 = vpop.f32.mrb[12].mxu1 }
 0x31f   : > { %v2328_v40 = vadd.f32 %v1488_v35, %v4420_v38  ;;  %v1490_v41 = vpop.f32.mrb[13].mxu0  ;;  %v1531_v42 = vpop.f32.mrb[13].mxu1  ;;  %v2330_v9 = vadd.f32 %v1529_v37, %v4423_v8 }
 0x320   : > { %v2329_v44 = vadd.f32 %v1490_v41, %v4421_v43  ;;  %v1492_v45 = vpop.f32.mrb[14].mxu0  ;;  %v1533_v46 = vpop.f32.mrb[14].mxu1  ;;  %v2331_v48 = vadd.f32 %v1531_v42, %v4422_v47 }
 0x321   : > { %2564 = vtanh.f32 %v2328_v40  ;;  %v1493_v49 = vpop.f32.mrb[15].mxu0  ;;  %v1534_v5 = vpop.f32.mrb[15].mxu1 }
 0x322   : > { %2566 = vtanh.f32 %v2329_v44 }
 0x323   : > { %2568 = vtanh.f32 %v2331_v48 }
 0x324   : > { %2570 = vtanh.f32 %v2330_v9 }
 0x32b   : > { %v2565_v10 = vpop.eup %2564 }
 0x32c   : > { %v1544_v11 = vadd.f32 1.0, %v2565_v10  ;;  %v2567_v12 = vpop.eup %2566 }
 0x32d   : > { %v1546_v14 = vadd.f32 1.0, %v2567_v12  ;;  %v2569_v15 = vpop.eup %2568  ;;  %v1561_v12 = vunpack.c.l.bf16 %v2315_v26  ;;  %v4428_v26 = vld [vmem:[#allocation9_spill] sm:$0xff] }
 0x32e   : > { %v1545_v13 = vmul.f32 0.5, %v1544_v11  ;;  %v2571_v28 = vpop.eup %2570 }
 0x32f   : > { %v1547_v16 = vmul.f32 0.5, %v1546_v14  ;;  %v1548_v31 = vadd.f32 1.0, %v2571_v28  ;;  %v1565_v14 = vadd.f32 %v1561_v12, %v3455_v1  ;;  %v4429_v28 = vld [vmem:[#allocation40_spill] sm:$0xff] }
 0x330   : > { %v1551_v17 = vmul.f32 %v2569_v15, %v1545_v13  ;;  %v2639_v12 = vld [vmem:[%s4121_s4 + $0xcc] ss:$16 sps:$4 sm:$0xff]  }
 0x331   : > { %v1550_v23 = vmul.f32 %v1547_v16, %v4424_v4  ;;  %v1549_v40 = vmul.f32 0.5, %v1548_v31  ;;  %v4433_v31 = vld [vmem:[#allocation44_spill] sm:$0xff] }
 0x333   : > { %v3762_v24 = vadd.f32 %v1551_v17, %v1550_v23  ;;  %v4425_v17 = vld [vmem:[#allocation34_spill] sm:$0xff] }
 0x335   : > { %2572 = vtanh.f32 %v3762_v24 }
 0x33e   : > { %v1601_v35 = vpop.f32.mrb[16].mxu0  ;;  %v1642_v37 = vpop.f32.mrb[16].mxu1 }
 0x33f   : > { %v1649_v41 = vadd.f32 %v1601_v35, %v1563_v32  ;;  %v1603_v42 = vpop.f32.mrb[17].mxu0  ;;  %v1644_v44 = vpop.f32.mrb[17].mxu1  ;;  %v1651_v15 = vadd.f32 %v1642_v37, %v1565_v14  ;;  %v4434_v32 = vld [vmem:[#allocation45_spill] sm:$0xff]  ;;  %v4437_v35 = vld [vmem:[#allocation48_spill] sm:$0xff] }
 0x340   : > { %v2573_v45 = vpop.eup %2572  ;;  %v1650_v46 = vadd.f32 %v1603_v42, %v1564_v33  ;;  %v1605_v48 = vpop.f32.mrb[18].mxu0  ;;  %v1652_v5 = vadd.f32 %v1644_v44, %v1566_v34  ;;  %v4436_v33 = vld [vmem:[#allocation47_spill] sm:$0xff]  ;;  %v2641_v14 = vld [vmem:[%s4121_s4 + $0xc8] ss:$16 sps:$4 sm:$0xff]  }
 0x341   : > { %v1646_v49 = vpop.f32.mrb[18].mxu1  ;;  %2574 = vtanh.f32 %v1649_v41  ;;  %v1606_v9 = vpop.f32.mrb[19].mxu0  ;;  %v1554_v11 = vmul.f32 %v2573_v45, %v1549_v40  ;;  %v4438_v40 = vld [vmem:[#allocation51_spill] sm:$0xff]  ;;  %v4447_v45 = vld [vmem:[#allocation61_spill] sm:$0xff] }
 0x342   : > { %v1647_v10 = vpop.f32.mrb[19].mxu1  ;;  %2576 = vtanh.f32 %v1650_v46  ;;  %v4448_v46 = vld [vmem:[#allocation28_spill] sm:$0xff]  ;;  %v4449_v48 = vld [vmem:[#allocation29_spill] sm:$0xff]  ;;  %v4450_v49 = vld [vmem:[#allocation30_spill] sm:$0xff] }
 0x343   : > { %v1555_v13 = vpack.c.bf16 %v1554_v11, %v1554_v11  ;;  %2578 = vtanh.f32 %v1652_v5  ;;  %v4451_v5 = vld [vmem:[#allocation31_spill] sm:$0xff]  ;;  %v2633_v10 = vld [vmem:[%s4121_s4 + $0x88] ss:$16 sps:$4 sm:$0xff]  }
 0x344   : > { %2580 = vtanh.f32 %v1651_v15  ;;  %v2632_v9 = vld [vmem:[%s4121_s4 + $0x80] ss:$16 sps:$4 sm:$0xff]   ;;  %v2638_v11 = vld [vmem:[%s4121_s4 + $0xc4] ss:$16 sps:$4 sm:$0xff]  }
 0x345   : > { %1701 = vmatmul.mubr.bf16.vlgmr.msra.gmra.mrb[20].mxu0 %v1555_v13  ;;  %1742 = vmatmul.mubr.bf16.vlgmr.msra.gmra.mrb[20].mxu1 %v1555_v13  ;;  %v2640_v13 = vld [vmem:[%s4121_s4 + $0xc0] ss:$16 sps:$4 sm:$0xff]   ;;  %v2642_v15 = vld [vmem:[%s4121_s4 + $0xe4] ss:$16 sps:$4 sm:$0xff]  }
 0x346   : > { %1752 = vmatpush1.bf16.msra.mxu0 %v4364_v51  ;;  %1793 = vmatpush1.bf16.msra.mxu1 %v4365_v60 }
 0x347   : > { %1753 = vmatprep.subr.bf16.mxu0 %v4366_v2  ;;  %1794 = vmatprep.subr.bf16.mxu1 %v4367_v20  ;;  %v4426_v20 = vld [vmem:[#allocation37_spill] sm:$0xff] }
 0x348   : > { %1783 = vmatprep.mubr.bf16.mxu0 %v4299_v6  ;;  %1824 = vmatprep.mubr.bf16.mxu1 %v4299_v6 }
 0x34a   : > { %1754 = vmatpush1.bf16.msra.mxu0 %v4368_v21  ;;  %1795 = vmatpush1.bf16.msra.mxu1 %v4369_v18 }
 0x34b   : > { %v2575_v16 = vpop.eup %2574  ;;  %1755 = vmatprep.subr.bf16.mxu0 %v4425_v17  ;;  %1796 = vmatprep.subr.bf16.mxu1 %v4371_v62  ;;  %v4430_v62 = vld [vmem:[#allocation41_spill] sm:$0xff] }
 0x34c   : > { %v1657_v51 = vadd.f32 1.0, %v2575_v16  ;;  %v2577_v60 = vpop.eup %2576  ;;  %v2643_v16 = vld [vmem:[%s4121_s4 + $0xec] ss:$16 sps:$4 sm:$0xff]   ;;  %v2644_v17 = vld [vmem:[%s4121_s4 + $0xe0] ss:$16 sps:$4 sm:$0xff]  }
 0x34d   : > { %v1659_v2 = vadd.f32 1.0, %v2577_v60  ;;  %v2579_v23 = vpop.eup %2578  ;;  %v2646_v60 = vld [vmem:[%s4123_s6 + $0x4] ss:$16 sps:$4 sm:$0xff]  }
 0x34e   : > { %v1658_v4 = vmul.f32 0.5, %v1657_v51  ;;  %1756 = vmatpush1.bf16.msra.mxu0 %v4372_v55  ;;  %1797 = vmatpush1.bf16.msra.mxu1 %v4426_v20  ;;  %v2581_v34 = vpop.eup %2580  ;;  %v2645_v51 = vld [vmem:[%s4121_s4 + $0xe8] ss:$16 sps:$4 sm:$0xff]  }
 0x34f   : > { %1757 = vmatprep.subr.bf16.mxu0 %v4427_v25  ;;  %1798 = vmatprep.subr.bf16.mxu1 %v4375_v7  ;;  %v1660_v21 = vmul.f32 0.5, %v1659_v2  ;;  %v4435_v7 = vld [vmem:[#allocation46_spill] sm:$0xff]  ;;  %v1661_v37 = vadd.f32 1.0, %v2581_v34  ;;  %v2648_v2 = vld [vmem:[%s4123_s6] ss:$16 sps:$4 sm:$0xff]  }
 0x350   : > { %v1664_v18 = vmul.f32 %v2579_v23, %v1658_v4  ;;  %v2647_v4 = vld [vmem:[%s4123_s6 + $0xc] ss:$16 sps:$4 sm:$0xff]   ;;  %v2649_v20 = vld [vmem:[%s4123_s6 + $0x8] ss:$16 sps:$4 sm:$0xff]   ;;  %v2650_v23 = vld [vmem:[%s4123_s6 + $0x24] ss:$16 sps:$4 sm:$0xff]  }
 0x351   : > { %v1663_v27 = vmul.f32 %v1660_v21, %v4428_v26  ;;  %v1662_v41 = vmul.f32 0.5, %v1661_v37  ;;  %v2651_v25 = vld [vmem:[%s4123_s6 + $0x2c] ss:$16 sps:$4 sm:$0xff]   ;;  %v2652_v21 = vld [vmem:[%s4123_s6 + $0x20] ss:$16 sps:$4 sm:$0xff]  }
 0x352   : > { %1758 = vmatpush1.bf16.msra.mxu0 %v4429_v28  ;;  %1799 = vmatpush1.bf16.msra.mxu1 %v4430_v62  ;;  %v2654_v26 = vld [vmem:[%s4123_s6 + $0x44] ss:$16 sps:$4 sm:$0xff]   ;;  %v2656_v28 = vld [vmem:[%s4123_s6 + $0x40] ss:$16 sps:$4 sm:$0xff]   ;;  %v2657_v62 = vld [vmem:[%s4123_s6 + $0x48] ss:$16 sps:$4 sm:$0xff]  }
 0x353   : > { %1759 = vmatprep.subr.bf16.mxu0 %v4431_v29  ;;  %1800 = vmatprep.subr.bf16.mxu1 %v4432_v30  ;;  %v3790_v55 = vadd.f32 %v1664_v18, %v1663_v27  ;;  %v2653_v18 = vld [vmem:[%s4123_s6 + $0x28] ss:$16 sps:$4 sm:$0xff]   ;;  %v2655_v27 = vld [vmem:[%s4123_s6 + $0x4c] ss:$16 sps:$4 sm:$0xff]   ;;  %v2658_v29 = vld [vmem:[%s4123_s6 + $0x64] ss:$16 sps:$4 sm:$0xff]  }
 0x354   : > { %v2659_v30 = vld [vmem:[%s4123_s6 + $0x6c] ss:$16 sps:$4 sm:$0xff]   ;;  %v2664_v34 = vld [vmem:[%s4123_s6 + $0x80] ss:$16 sps:$4 sm:$0xff]   ;;  %v2666_v37 = vld [vmem:[%s4123_s6 + $0xa4] ss:$16 sps:$4 sm:$0xff]  }
 0x355   : > { %2582 = vtanh.f32 %v3790_v55 }
 0x356   : > { %1760 = vmatpush1.bf16.msra.mxu0 %v4433_v31  ;;  %1801 = vmatpush1.bf16.msra.mxu1 %v4434_v32  ;;  %v2660_v31 = vld [vmem:[%s4123_s6 + $0x60] ss:$16 sps:$4 sm:$0xff]   ;;  %v2661_v32 = vld [vmem:[%s4123_s6 + $0x68] ss:$16 sps:$4 sm:$0xff]  }
 0x357   : > { %1761 = vmatprep.subr.bf16.mxu0 %v4435_v7  ;;  %1802 = vmatprep.subr.bf16.mxu1 %v4436_v33  ;;  %v2662_v7 = vld [vmem:[%s4123_s6 + $0x84] ss:$16 sps:$4 sm:$0xff]   ;;  %v2663_v33 = vld [vmem:[%s4123_s6 + $0x8c] ss:$16 sps:$4 sm:$0xff]  }
 0x35a   : > { %1762 = vmatpush1.bf16.msra.mxu0 %v4437_v35  ;;  %1803 = vmatpush1.bf16.msra.mxu1 %v4386_v53  ;;  %v2665_v35 = vld [vmem:[%s4123_s6 + $0x88] ss:$16 sps:$4 sm:$0xff]  }
 0x35b   : > { %1763 = vmatprep.subr.bf16.mxu0 %v4387_v22  ;;  %1804 = vmatprep.subr.bf16.mxu1 %v4438_v40  ;;  %v4439_v22 = vld [vmem:[#allocation11_spill] sm:$0xff]  ;;  %v2667_v40 = vld [vmem:[%s4123_s6 + $0xac] ss:$16 sps:$4 sm:$0xff]  }
 0x35e   : > { %1764 = vmatpush1.bf16.msra.mxu0 %v4389_v3  ;;  %1805 = vmatpush1.bf16.msra.mxu1 %v4390_v19  ;;  %v4440_v3 = vld [vmem:[#allocation12_spill] sm:$0xff]  ;;  %v4441_v19 = vld [vmem:[#allocation14_spill] sm:$0xff] }
 0x35f   : > { %1765 = vmatprep.subr.bf16.mxu0 %v4391_v58  ;;  %1806 = vmatprep.subr.bf16.mxu1 %v4392_v36  ;;  %v2583_v42 = vpop.eup %2582  ;;  %v4442_v58 = vld [vmem:[#allocation13_spill] sm:$0xff]  ;;  %v4443_v36 = vld [vmem:[#allocation15_spill] sm:$0xff] }
 0x360   : > { %v1667_v44 = vmul.f32 %v2583_v42, %v1662_v41  ;;  %v2668_v41 = vld [vmem:[%s4123_s6 + $0xa0] ss:$16 sps:$4 sm:$0xff]   ;;  %v2669_v42 = vld [vmem:[%s4123_s6 + $0xa8] ss:$16 sps:$4 sm:$0xff]  }
 0x362   : > { %1766 = vmatpush1.bf16.msra.mxu0 %v4393_v39  ;;  %1807 = vmatpush1.bf16.msra.mxu1 %v4394_v57  ;;  %v1750_v53 = vpack.c.bf16 %v1667_v44, %v1667_v44  ;;  %v4444_v39 = vld [vmem:[#allocation58_spill] sm:$0xff]  ;;  %v4445_v57 = vld [vmem:[#allocation59_spill] sm:$0xff] }
 0x363   : > { %1864 = vmatprep.subr.bf16.mxu0 %v3600_v54  ;;  %1905 = vmatprep.subr.bf16.mxu1 %v4439_v22  ;;  %v4446_v54 = vld [vmem:[#allocation60_spill] sm:$0xff]  ;;  %v2670_v44 = vld [vmem:[%s4123_s6 + $0xc4] ss:$16 sps:$4 sm:$0xff]  }
 0x364   : > { %v2671_v22 = vld [vmem:[%s4123_s6 + $0xcc] ss:$16 sps:$4 sm:$0xff]  }
 0x365   : > { %1784 = vmatmul.mubr.bf16.vlgmr.msra.gmra.mrb[20].mxu0 %v1750_v53  ;;  %1825 = vmatmul.mubr.bf16.vlgmr.msra.gmra.mrb[20].mxu1 %v1750_v53 }
 0x366   : > { %1865 = vmatpush1.bf16.msra.mxu0 %v4440_v3  ;;  %1906 = vmatpush1.bf16.msra.mxu1 %v4441_v19  ;;  %v2673_v3 = vld [vmem:[%s4123_s6 + $0xc8] ss:$16 sps:$4 sm:$0xff]   ;;  %v2674_v19 = vld [vmem:[%s4123_s6 + $0xe4] ss:$16 sps:$4 sm:$0xff]  }
 0x367   : > { %1866 = vmatprep.subr.bf16.mxu0 %v4442_v58  ;;  %1907 = vmatprep.subr.bf16.mxu1 %v4443_v36  ;;  %v2675_v58 = vld [vmem:[%s4123_s6 + $0xec] ss:$16 sps:$4 sm:$0xff]   ;;  %v2676_v36 = vld [vmem:[%s4123_s6 + $0xe0] ss:$16 sps:$4 sm:$0xff]  }
 0x368   : > { %1896 = vmatprep.mubr.bf16.mxu0 %v4299_v6  ;;  %1937 = vmatprep.mubr.bf16.mxu1 %v4299_v6 }
 0x36a   : > { %1867 = vmatpush1.bf16.msra.mxu0 %v4444_v39  ;;  %1908 = vmatpush1.bf16.msra.mxu1 %v4445_v57  ;;  %v2677_v39 = vld [vmem:[%s4123_s6 + $0xe8] ss:$16 sps:$4 sm:$0xff]   ;;  %v2678_v57 = vld [vmem:[%s4122_s5 + $0x4] ss:$16 sps:$4 sm:$0xff]  }
 0x36b   : > { %1868 = vmatprep.subr.bf16.mxu0 %v4446_v54  ;;  %1909 = vmatprep.subr.bf16.mxu1 %v4447_v45  ;;  %v2679_v54 = vld [vmem:[%s4122_s5 + $0xc] ss:$16 sps:$4 sm:$0xff]  }
 0x36e   : > { %1869 = vmatpush1.bf16.msra.mxu0 %v4448_v46  ;;  %1910 = vmatpush1.bf16.msra.mxu1 %v4449_v48 }
 0x36f   : > { %1870 = vmatprep.subr.bf16.mxu0 %v4450_v49  ;;  %1911 = vmatprep.subr.bf16.mxu1 %v4451_v5 }
 0x372   : > { %1871 = vmatpush1.bf16.msra.mxu0 %v3686_v59  ;;  %1912 = vmatpush1.bf16.msra.mxu1 %v3692_v0  ;;  %v2634_v59 = vld [vmem:[%s4121_s4 + $0xa4] ss:$16 sps:$4 sm:$0xff]   ;;  %v2637_v0 = vld [vmem:[%s4121_s4 + $0xa8] ss:$16 sps:$4 sm:$0xff]  }
 0x373   : > { %1872 = vmatprep.subr.bf16.mxu0 %v3698_v61  ;;  %1913 = vmatprep.subr.bf16.mxu1 %v3704_v50  ;;  %v2635_v61 = vld [vmem:[%s4121_s4 + $0xac] ss:$16 sps:$4 sm:$0xff]   ;;  %v2636_v50 = vld [vmem:[%s4121_s4 + $0xa0] ss:$16 sps:$4 sm:$0xff]  }
 0x376   : > { %1873 = vmatpush1.bf16.msra.mxu0 %v2632_v9  ;;  %1914 = vmatpush1.bf16.msra.mxu1 %v2633_v10 }
 0x377   : > { %1874 = vmatprep.subr.bf16.mxu0 %v2634_v59  ;;  %1915 = vmatprep.subr.bf16.mxu1 %v2635_v61 }
 0x37a   : > { %1875 = vmatpush1.bf16.msra.mxu0 %v2636_v50  ;;  %1916 = vmatpush1.bf16.msra.mxu1 %v2637_v0 }
 0x37b   : > { %1876 = vmatprep.subr.bf16.mxu0 %v2638_v11  ;;  %1917 = vmatprep.subr.bf16.mxu1 %v2639_v12 }
 0x37e   : > { %1877 = vmatpush1.bf16.msra.mxu0 %v2640_v13  ;;  %1918 = vmatpush1.bf16.msra.mxu1 %v2641_v14 }
 0x37f   : > { %1878 = vmatprep.subr.bf16.mxu0 %v2642_v15  ;;  %1919 = vmatprep.subr.bf16.mxu1 %v2643_v16 }
 0x382   : > { %1879 = vmatpush1.bf16.msra.mxu0 %v2644_v17  ;;  %1920 = vmatpush1.bf16.msra.mxu1 %v2645_v51 }
 0x383   : > { %1965 = vmatprep.subr.bf16.mxu0 %v2646_v60  ;;  %2006 = vmatprep.subr.bf16.mxu1 %v2647_v4 }
 0x385   : > { %1897 = vmatmul.mubr.bf16.vlgmr.msra.gmra.mrb[24].mxu0 %v1750_v53  ;;  %1938 = vmatmul.mubr.bf16.vlgmr.msra.gmra.mrb[24].mxu1 %v1750_v53  ;;  %v2672_v53 = vld [vmem:[%s4123_s6 + $0xc0] ss:$16 sps:$4 sm:$0xff]  }
 0x386   : > { %1966 = vmatpush1.bf16.msra.mxu0 %v2648_v2  ;;  %2007 = vmatpush1.bf16.msra.mxu1 %v2649_v20  ;;  %v2316_v20 = vld [vmem:[%s2816_s15 + $0x30] sm:$0xff] }
 0x387   : > { %1967 = vmatprep.subr.bf16.mxu0 %v2650_v23  ;;  %2008 = vmatprep.subr.bf16.mxu1 %v2651_v25  ;;  %v2317_v23 = vld [vmem:[%s2816_s15 + $0x38] sm:$0xff]  ;;  %v1856_v25 = vunpack.c.l.bf16 %v2316_v20 }
 0x388   : > { %1997 = vmatprep.mubr.bf16.mxu0 %v4299_v6  ;;  %2038 = vmatprep.mubr.bf16.mxu1 %v4299_v6 }
 0x38a   : > { %1968 = vmatpush1.bf16.msra.mxu0 %v2652_v21  ;;  %2009 = vmatpush1.bf16.msra.mxu1 %v2653_v18  ;;  %v1857_v18 = vunpack.c.h.bf16 %v2316_v20  ;;  %v2700_v20 = vld [vmem:[%s4122_s5 + $0xa0] ss:$16 sps:$4 sm:$0xff]  }
 0x38b   : > { %1969 = vmatprep.subr.bf16.mxu0 %v2654_v26  ;;  %2010 = vmatprep.subr.bf16.mxu1 %v2655_v27  ;;  %v1859_v26 = vunpack.c.h.bf16 %v2317_v23 }
 0x38e   : > { %1970 = vmatpush1.bf16.msra.mxu0 %v2656_v28  ;;  %2011 = vmatpush1.bf16.msra.mxu1 %v2657_v62  ;;  %v1860_v28 = vadd.f32 %v1856_v25, %v4361_v63  ;;  %v1861_v62 = vadd.f32 %v1857_v18, %v4362_v52  ;;  %v1858_v63 = vunpack.c.l.bf16 %v2317_v23  ;;  %v2701_v23 = vld [vmem:[%s4122_s5 + $0xa8] ss:$16 sps:$4 sm:$0xff]   ;;  %v2703_v18 = vld [vmem:[%s4122_s5 + $0xcc] ss:$16 sps:$4 sm:$0xff]  }
 0x38f   : > { %1971 = vmatprep.subr.bf16.mxu0 %v2658_v29  ;;  %2012 = vmatprep.subr.bf16.mxu1 %v2659_v30  ;;  %v1863_v29 = vadd.f32 %v1859_v26, %v4363_v56  ;;  %v2704_v26 = vld [vmem:[%s4122_s5 + $0xc0] ss:$16 sps:$4 sm:$0xff]  }
 0x390   : > { %v1862_v56 = vadd.f32 %v1858_v63, %v3455_v1 }
 0x392   : > { %1972 = vmatpush1.bf16.msra.mxu0 %v2660_v31  ;;  %2013 = vmatpush1.bf16.msra.mxu1 %v2661_v32 }
 0x393   : > { %1973 = vmatprep.subr.bf16.mxu0 %v2662_v7  ;;  %2014 = vmatprep.subr.bf16.mxu1 %v2663_v33 }
 0x396   : > { %1974 = vmatpush1.bf16.msra.mxu0 %v2664_v34  ;;  %2015 = vmatpush1.bf16.msra.mxu1 %v2665_v35 }
 0x397   : > { %1975 = vmatprep.subr.bf16.mxu0 %v2666_v37  ;;  %2016 = vmatprep.subr.bf16.mxu1 %v2667_v40 }
 0x39a   : > { %1976 = vmatpush1.bf16.msra.mxu0 %v2668_v41  ;;  %2017 = vmatpush1.bf16.msra.mxu1 %v2669_v42 }
 0x39b   : > { %1977 = vmatprep.subr.bf16.mxu0 %v2670_v44  ;;  %2018 = vmatprep.subr.bf16.mxu1 %v2671_v22 }
 0x39e   : > { %1978 = vmatpush1.bf16.msra.mxu0 %v2672_v53  ;;  %2019 = vmatpush1.bf16.msra.mxu1 %v2673_v3  ;;  %v2680_v53 = vld [vmem:[%s4122_s5] ss:$16 sps:$4 sm:$0xff]   ;;  %v2681_v3 = vld [vmem:[%s4122_s5 + $0x8] ss:$16 sps:$4 sm:$0xff]  }
 0x39f   : > { %1979 = vmatprep.subr.bf16.mxu0 %v2674_v19  ;;  %2020 = vmatprep.subr.bf16.mxu1 %v2675_v58  ;;  %v2682_v19 = vld [vmem:[%s4122_s5 + $0x24] ss:$16 sps:$4 sm:$0xff]   ;;  %v2683_v58 = vld [vmem:[%s4122_s5 + $0x2c] ss:$16 sps:$4 sm:$0xff]  }
 0x3a2   : > { %1980 = vmatpush1.bf16.msra.mxu0 %v2676_v36  ;;  %2021 = vmatpush1.bf16.msra.mxu1 %v2677_v39  ;;  %v2684_v36 = vld [vmem:[%s4122_s5 + $0x20] ss:$16 sps:$4 sm:$0xff]   ;;  %v2685_v39 = vld [vmem:[%s4122_s5 + $0x28] ss:$16 sps:$4 sm:$0xff]  }
 0x3a3   : > { %2048 = vmatprep.subr.bf16.mxu0 %v2678_v57  ;;  %2089 = vmatprep.subr.bf16.mxu1 %v2679_v54  ;;  %v2686_v54 = vld [vmem:[%s4122_s5 + $0x44] ss:$16 sps:$4 sm:$0xff]  }
 0x438   : > { %v1785_v45 = vpop.f32.mrb[20].mxu0  ;;  %v1826_v46 = vpop.f32.mrb[20].mxu1 }
 0x439   : > { %v2332_v48 = vadd.f32 %v1785_v45, %v4420_v38  ;;  %v1787_v49 = vpop.f32.mrb[21].mxu0  ;;  %v1828_v5 = vpop.f32.mrb[21].mxu1  ;;  %v2334_v11 = vadd.f32 %v1826_v46, %v4423_v8 }
 0x43a   : > { %v2333_v9 = vadd.f32 %v1787_v49, %v4421_v43  ;;  %v1789_v10 = vpop.f32.mrb[22].mxu0  ;;  %v1830_v59 = vpop.f32.mrb[22].mxu1  ;;  %v2335_v61 = vadd.f32 %v1828_v5, %v4422_v47  ;;  %v2688_v5 = vld [vmem:[%s4122_s5 + $0x40] ss:$16 sps:$4 sm:$0xff]  }
 0x43b   : > { %2584 = vtanh.f32 %v2332_v48  ;;  %v1790_v50 = vpop.f32.mrb[23].mxu0  ;;  %v1831_v0 = vpop.f32.mrb[23].mxu1  ;;  %v2690_v59 = vld [vmem:[%s4122_s5 + $0x64] ss:$16 sps:$4 sm:$0xff]  }
 0x43c   : > { %2586 = vtanh.f32 %v2333_v9  ;;  %v2689_v9 = vld [vmem:[%s4122_s5 + $0x48] ss:$16 sps:$4 sm:$0xff]  }
 0x43d   : > { %2588 = vtanh.f32 %v2335_v61  ;;  %v2691_v61 = vld [vmem:[%s4122_s5 + $0x6c] ss:$16 sps:$4 sm:$0xff]  }
 0x43e   : > { %2590 = vtanh.f32 %v2334_v11 }
 0x445   : > { %v2585_v12 = vpop.eup %2584 }
 0x446   : > { %v1841_v13 = vadd.f32 1.0, %v2585_v12  ;;  %v2587_v14 = vpop.eup %2586  ;;  %v2692_v12 = vld [vmem:[%s4122_s5 + $0x60] ss:$16 sps:$4 sm:$0xff]  }
 0x447   : > { %v1843_v16 = vadd.f32 1.0, %v2587_v14  ;;  %v2589_v17 = vpop.eup %2588  ;;  %v2694_v14 = vld [vmem:[%s4122_s5 + $0x84] ss:$16 sps:$4 sm:$0xff]  }
 0x448   : > { %v1842_v15 = vmul.f32 0.5, %v1841_v13  ;;  %v2591_v21 = vpop.eup %2590  ;;  %v2693_v13 = vld [vmem:[%s4122_s5 + $0x68] ss:$16 sps:$4 sm:$0xff]  }
 0x449   : > { %v1844_v51 = vmul.f32 0.5, %v1843_v16  ;;  %v1845_v27 = vadd.f32 1.0, %v2591_v21  ;;  %v2696_v16 = vld [vmem:[%s4122_s5 + $0x80] ss:$16 sps:$4 sm:$0xff]   ;;  %v2702_v21 = vld [vmem:[%s4122_s5 + $0xc4] ss:$16 sps:$4 sm:$0xff]  }
 0x44a   : > { %v1848_v60 = vmul.f32 %v2589_v17, %v1842_v15  ;;  %v2695_v15 = vld [vmem:[%s4122_s5 + $0x8c] ss:$16 sps:$4 sm:$0xff]   ;;  %v2697_v17 = vld [vmem:[%s4122_s5 + $0x88] ss:$16 sps:$4 sm:$0xff]  }
 0x44b   : > { %v1847_v4 = vmul.f32 %v1844_v51, %v3762_v24  ;;  %v1846_v24 = vmul.f32 0.5, %v1845_v27  ;;  %v2698_v51 = vld [vmem:[%s4122_s5 + $0xa4] ss:$16 sps:$4 sm:$0xff]   ;;  %v2705_v27 = vld [vmem:[%s4122_s5 + $0xc8] ss:$16 sps:$4 sm:$0xff]  }
 0x44d   : > { %v3978_v2 = vadd.f32 %v1848_v60, %v1847_v4  ;;  %v2699_v60 = vld [vmem:[%s4122_s5 + $0xac] ss:$16 sps:$4 sm:$0xff]  }
 0x44f   : > { %2592 = vtanh.f32 %v3978_v2 }
 0x458   : > { %v1898_v30 = vpop.f32.mrb[24].mxu0  ;;  %v1939_v31 = vpop.f32.mrb[24].mxu1 }
 0x459   : > { %v1946_v32 = vadd.f32 %v1898_v30, %v1860_v28  ;;  %v1900_v7 = vpop.f32.mrb[25].mxu0  ;;  %v1941_v33 = vpop.f32.mrb[25].mxu1  ;;  %v1948_v1 = vadd.f32 %v1939_v31, %v1862_v56 }
 0x45a   : > { %v2593_v34 = vpop.eup %2592  ;;  %v1947_v35 = vadd.f32 %v1900_v7, %v1861_v62  ;;  %v1902_v37 = vpop.f32.mrb[26].mxu0  ;;  %v1949_v41 = vadd.f32 %v1941_v33, %v1863_v29  ;;  %v2706_v62 = vld [vmem:[%s4122_s5 + $0xe4] ss:$16 sps:$4 sm:$0xff]   ;;  %v2707_v29 = vld [vmem:[%s4122_s5 + $0xec] ss:$16 sps:$4 sm:$0xff]  }
 0x45b   : > { %v1943_v40 = vpop.f32.mrb[26].mxu1  ;;  %2594 = vtanh.f32 %v1946_v32  ;;  %v1903_v42 = vpop.f32.mrb[27].mxu0  ;;  %v1851_v22 = vmul.f32 %v2593_v34, %v1846_v24  ;;  %v2708_v24 = vld [vmem:[%s4122_s5 + $0xe0] ss:$16 sps:$4 sm:$0xff]   ;;  %v2709_v32 = vld [vmem:[%s4122_s5 + $0xe8] ss:$16 sps:$4 sm:$0xff]  }
 0x45c   : > { %v1944_v44 = vpop.f32.mrb[27].mxu1  ;;  %2596 = vtanh.f32 %v1947_v35 }
 0x45d   : > { %v1852_v52 = vpack.c.bf16 %v1851_v22, %v1851_v22  ;;  %2598 = vtanh.f32 %v1949_v41 }
 0x45e   : > { %2600 = vtanh.f32 %v1948_v1 }
 0x45f   : > { %1998 = vmatmul.mubr.bf16.vlgmr.msra.gmra.mrb[28].mxu0 %v1852_v52  ;;  %2039 = vmatmul.mubr.bf16.vlgmr.msra.gmra.mrb[28].mxu1 %v1852_v52 }
 0x460   : > { %2049 = vmatpush1.bf16.msra.mxu0 %v2680_v53  ;;  %2090 = vmatpush1.bf16.msra.mxu1 %v2681_v3 }
 0x461   : > { %2050 = vmatprep.subr.bf16.mxu0 %v2682_v19  ;;  %2091 = vmatprep.subr.bf16.mxu1 %v2683_v58 }
 0x462   : > { %2080 = vmatprep.mubr.bf16.mxu0 %v4299_v6  ;;  %2121 = vmatprep.mubr.bf16.mxu1 %v4299_v6  ;;  %v2687_v6 = vld [vmem:[%s4122_s5 + $0x4c] ss:$16 sps:$4 sm:$0xff]  }
 0x464   : > { %2051 = vmatpush1.bf16.msra.mxu0 %v2684_v36  ;;  %2092 = vmatpush1.bf16.msra.mxu1 %v2685_v39 }
 0x465   : > { %v2595_v57 = vpop.eup %2594  ;;  %2052 = vmatprep.subr.bf16.mxu0 %v2686_v54  ;;  %2093 = vmatprep.subr.bf16.mxu1 %v2687_v6 }
 0x466   : > { %v1954_v45 = vadd.f32 1.0, %v2595_v57  ;;  %v2597_v46 = vpop.eup %2596 }
 0x467   : > { %v1956_v49 = vadd.f32 1.0, %v2597_v46  ;;  %v2599_v10 = vpop.eup %2598 }
 0x468   : > { %v1955_v48 = vmul.f32 0.5, %v1954_v45  ;;  %2053 = vmatpush1.bf16.msra.mxu0 %v2688_v5  ;;  %2094 = vmatpush1.bf16.msra.mxu1 %v2689_v9  ;;  %v2601_v4 = vpop.eup %2600 }
 0x469   : > { %2054 = vmatprep.subr.bf16.mxu0 %v2690_v59  ;;  %2095 = vmatprep.subr.bf16.mxu1 %v2691_v61  ;;  %v1957_v50 = vmul.f32 0.5, %v1956_v49  ;;  %v1958_v25 = vadd.f32 1.0, %v2601_v4 }
 0x46a   : > { %v1961_v0 = vmul.f32 %v2599_v10, %v1955_v48 }
 0x46b   : > { %v1960_v11 = vmul.f32 %v1957_v50, %v3790_v55  ;;  %v1959_v28 = vmul.f32 0.5, %v1958_v25 }
 0x46c   : > { %2055 = vmatpush1.bf16.msra.mxu0 %v2692_v12  ;;  %2096 = vmatpush1.bf16.msra.mxu1 %v2693_v13 }
 0x46d   : > { %2056 = vmatprep.subr.bf16.mxu0 %v2694_v14  ;;  %2097 = vmatprep.subr.bf16.mxu1 %v2695_v15  ;;  %v1962_v55 = vadd.f32 %v1961_v0, %v1960_v11 }
 0x46f   : > { %2602 = vtanh.f32 %v1962_v55  ;;  %2151 = vst [vmem:[#allocation2] sm:$0xff] %v1962_v55 }
 0x470   : > { %2057 = vmatpush1.bf16.msra.mxu0 %v2696_v16  ;;  %2098 = vmatpush1.bf16.msra.mxu1 %v2697_v17 }
 0x471   : > { %2058 = vmatprep.subr.bf16.mxu0 %v2698_v51  ;;  %2099 = vmatprep.subr.bf16.mxu1 %v2699_v60 }
 0x474   : > { %2059 = vmatpush1.bf16.msra.mxu0 %v2700_v20  ;;  %2100 = vmatpush1.bf16.msra.mxu1 %v2701_v23 }
 0x475   : > { %2060 = vmatprep.subr.bf16.mxu0 %v2702_v21  ;;  %2101 = vmatprep.subr.bf16.mxu1 %v2703_v18 }
 0x478   : > { %2061 = vmatpush1.bf16.msra.mxu0 %v2704_v26  ;;  %2102 = vmatpush1.bf16.msra.mxu1 %v2705_v27 }
 0x479   : > { %2062 = vmatprep.subr.bf16.mxu0 %v2706_v62  ;;  %2103 = vmatprep.subr.bf16.mxu1 %v2707_v29  ;;  %v2603_v30 = vpop.eup %2602 }
 0x47a   : > { %v1964_v31 = vmul.f32 %v2603_v30, %v1959_v28 }
 0x47c   : > { %2063 = vmatpush1.bf16.msra.mxu0 %v2708_v24  ;;  %2104 = vmatpush1.bf16.msra.mxu1 %v2709_v32  ;;  %v2047_v7 = vpack.c.bf16 %v1964_v31, %v1964_v31  ;;  %2149 = vst [vmem:[%s4125_s8] sm:$0xff] %v1964_v31 }
 0x47f   : > { %2081 = vmatmul.mubr.bf16.vlgmr.msra.gmra.mrb[28].mxu0 %v2047_v7  ;;  %2122 = vmatmul.mubr.bf16.vlgmr.msra.gmra.mrb[28].mxu1 %v2047_v7 }
 0x552   : > { %v2082_v33 = vpop.f32.mrb[28].mxu0  ;;  %v2123_v34 = vpop.f32.mrb[28].mxu1 }
 0x553   : > { %v2336_v35 = vadd.f32 %v2082_v33, %v4420_v38  ;;  %v2084_v37 = vpop.f32.mrb[29].mxu0  ;;  %v2125_v40 = vpop.f32.mrb[29].mxu1  ;;  %v2338_v56 = vadd.f32 %v2123_v34, %v4423_v8 }
 0x554   : > { %v2337_v41 = vadd.f32 %v2084_v37, %v4421_v43  ;;  %v2086_v42 = vpop.f32.mrb[30].mxu0  ;;  %v2127_v44 = vpop.f32.mrb[30].mxu1  ;;  %v2339_v22 = vadd.f32 %v2125_v40, %v4422_v47 }
 0x555   : > { %2604 = vtanh.f32 %v2336_v35  ;;  %v2087_v63 = vpop.f32.mrb[31].mxu0  ;;  %v2128_v52 = vpop.f32.mrb[31].mxu1 }
 0x556   : > { %2606 = vtanh.f32 %v2337_v41 }
 0x557   : > { %2608 = vtanh.f32 %v2339_v22 }
 0x558   : > { %2610 = vtanh.f32 %v2338_v56 }
 0x55f   : > { %v2605_v53 = vpop.eup %2604 }
 0x560   : > { %v2138_v3 = vadd.f32 1.0, %v2605_v53  ;;  %v2607_v19 = vpop.eup %2606 }
 0x561   : > { %v2140_v58 = vadd.f32 1.0, %v2607_v19  ;;  %v2609_v43 = vpop.eup %2608 }
 0x562   : > { %v2139_v38 = vmul.f32 0.5, %v2138_v3 }
 0x563   : > { %v2141_v1 = vmul.f32 0.5, %v2140_v58 }
 0x564   : > { %v2145_v36 = vmul.f32 %v2609_v43, %v2139_v38 }
 0x565   : > { %v2144_v47 = vmul.f32 %v2141_v1, %v3978_v2 }
 0x567   : > { %v2146_v39 = vadd.f32 %v2145_v36, %v2144_v47 }
 0x569   : > { %2612 = vtanh.f32 %v2146_v39  ;;  %2152 = vst [vmem:[#allocation2 + $0x8] sm:$0xff] %v2146_v39 }
 0x56a   : > { %2723 = shalt.err (!%p2720_p12)
}
 0x56b   : > { %s2724_s27 = scalar_lea.hbm %s4126_s9, 256 }
 0x56c   : > { %p2725_p13 = scmp.ne.s32.totalorder %s4126_s9, %s2724_s27  ;;  %p2730_p2 = scmp.lt.u32.totalorder %s2724_s27, %s4126_s9 }
 0x56e   : > { %p2726_p0 = pnand %p2725_p13, %p2376_p5 }
 0x570   : > { %p2727_p1 = pneg %p2726_p0 }
 0x572   : > { %p2732_p3 = pnand %p2730_p2, %p2727_p1 }
 0x574   : > { %2735 = shalt.err (!%p2732_p3)
}
 0x575   : > { %s2750_s13 = smov 128   ;;  %s2751_s14 = smov 8   ;;  %v2611_v8 = vpop.eup %2610 }
 0x576   : > { %2373 = dma.vmem_to_hbm [thread:$0]  (%p2376_p5), %s2163_s23, 256, %s4126_s9, [#allocation3], %s2750_s13, %s2750_s13, %s2751_s14   ;;  %v2142_v2 = vadd.f32 1.0, %v2611_v8  ;;  %v2613_v54 = vpop.eup %2612 }
 0x578   : > { %v2143_v57 = vmul.f32 0.5, %v2142_v2 }
 0x57a   : > { %v2148_v6 = vmul.f32 %v2613_v54, %v2143_v57 }
 0x57c   : > { %2318 = vst [vmem:[%s4125_s8 + $0x8] sm:$0xff] %v2148_v6 }
 0x57d   : > { %2741 = dma.done.wait (%p2376_p5), [#allocation3], 256  }
 0x57e   : > { %2743 = vsyncadd (%p2376_p5), [#allocation3], 4294967040 }
 0x57f PF: > { %s21_s30 = sadd.s32 1, %s2746_s30  }
 0x580   : > { %p18_p4 = scmp.ge.s32.totalorder %s21_s30, 4  }
 0x582   :  { %20 = sbr.rel (!%p18_p4) target bundleno = 1 (0x1), region = 96 }
 0x589   :  { %2181 = vsyncpa [#allocation3], 1 }
 0x58a   :  { %2183 = vsyncpa [#allocation3 + $0x1], 1 }

</bundles_post_ra>
